<compile_context>
chip_gen: v7x
topology: tpu7x:2x2x1
jax: 0.10.0
libtpu: 0.0.40
codegen_flags: <defaults>
</compile_context>

<pallas_src>
import functools

import jax
import jax.numpy as jnp
import numpy as np
from jax import lax
from jax.experimental import pallas as pl
from jax.experimental.pallas import tpu as pltpu


# ------------------------------ fused kernel --------------------------------


def _ehffb_kernel(x_ref, masks_ref,
                  wd1_ref, bd1_ref, w1_ref, b1_ref, w2_ref, b2_ref,
                  w11_ref, b11_ref, wd2_ref, bd2_ref, w12_ref, b12_ref,
                  w3_ref, b3_ref, w13_ref, b13_ref, eca_ref,
                  o_ref, im2col_ref, *, H, W, C):
    """Whole EHFFB block for one batch item.

    Activations are (C, H*W) f32 values (spatial on the lane axis).
      x_ref/o_ref      : (1, C, H*W)
      masks_ref        : (16, H*W) precomputed border masks
                         (rows 0..7 : dilation-1 taps, rows 8..15 : dilation-2)
      3x3 conv weights : (C, 9*C)   (Cout, (kh,kw,Cin))   biases: (C, 1)
      1x1 conv weights : (k, C, C)  split per concat part  biases: (C, 1)
      eca_ref          : (C, C) band matrix of the k=3 channel conv
      im2col_ref       : (9*C, H*W) VMEM scratch for the im2col stacks
    """
    HW = H * W
    x = x_ref[0]                                                # (C, HW)

    def conv3x3(xin, w_ref, b_ref, dil, mbase):
        # Build the (9*C, HW) im2col stack in VMEM scratch with static lane
        # rolls + precomputed zero-padding masks, then one MXU dot.
        t = 0   # tap slot (row block) in the im2col scratch
        m = 0   # non-center mask row within this dilation's 8 masks
        for kh in range(3):
            for kw in range(3):
                oh = (kh - 1) * dil
                ow = (kw - 1) * dil
                if oh == 0 and ow == 0:
                    tap = xin
                else:
                    off = oh * W + ow
                    shifted = pltpu.roll(xin, shift=(-off) % HW, axis=1)
                    mask = masks_ref[mbase + m:mbase + m + 1, :]   # (1, HW)
                    tap = shifted * mask
                    m += 1
                im2col_ref[t * C:(t + 1) * C, :] = tap
                t += 1
        out = jnp.dot(w_ref[...], im2col_ref[...],
                      preferred_element_type=jnp.float32) + b_ref[...]
        return jnp.maximum(out, 0.0)                            # all 3x3 convs are ReLU'd

    def conv1x1(parts, w_ref, b_ref):
        # 1x1 conv over a channel-concat, with the concat expressed as a sum
        # of per-part dots (no concat materialization).
        out = jnp.dot(w_ref[0], parts[0], preferred_element_type=jnp.float32)
        for i in range(1, len(parts)):
            out = out + jnp.dot(w_ref[i], parts[i],
                                preferred_element_type=jnp.float32)
        return out + b_ref[...]

    d1 = conv3x3(x, wd1_ref, bd1_ref, 2, 8)          # relu(conv_d1(x))
    x1 = conv3x3(d1, w1_ref, b1_ref, 1, 0)           # relu(conv_1(d1))
    x2 = conv3x3(x1 + x, w2_ref, b2_ref, 1, 0)       # relu(conv_2(x1+x))
    x11 = conv1x1([x1, x2], w11_ref, b11_ref)        # conv1x1_1(cat(x1,x2))
    d2 = conv3x3(x11, wd2_ref, bd2_ref, 2, 8)        # relu(conv_d2(x11))
    x12 = conv1x1([d1, d2], w12_ref, b12_ref)        # conv1x1_2(cat(d1,d2))
    x3 = conv3x3(x12, w3_ref, b3_ref, 1, 0)          # relu(conv_3(x12))
    x13 = conv1x1([x1, x2, x3], w13_ref, b13_ref)    # conv1x1_3(cat(x1,x2,x3))

    # ECA + residual.  mean_p(M @ x13) == M @ mean_p(x13) (band conv commutes
    # with spatial pooling), so we use a well-shaped (C,C)x(C,HW) dot followed
    # by a lane reduce instead of a degenerate (C,C)x(C,1) matmul.
    z = jnp.mean(jnp.dot(eca_ref[...], x13, preferred_element_type=jnp.float32),
                 axis=1, keepdims=True)                          # (C, 1)
    s = jax.nn.sigmoid(z)                                        # (C, 1)
    o_ref[0] = x13 * s + x                                       # eca(x13) + x


# ------------------------------ wrapper --------------------------------------


def _zero_idx(n, *, ndim):
    return (0,) * ndim


def _build_border_masks(H, W):
    """(16, H*W) f32: zero-padding validity masks for the 8 non-center taps of
    a 3x3 conv, for dilation 1 (rows 0..7) and dilation 2 (rows 8..15)."""
    HW = H * W
    h = np.arange(HW) // W
    w = np.arange(HW) % W
    rows = []
    for dil in (1, 2):
        for kh in range(3):
            for kw in range(3):
                if kh == 1 and kw == 1:
                    continue
                oh = (kh - 1) * dil
                ow = (kw - 1) * dil
                valid = ((h + oh >= 0) & (h + oh < H) &
                         (w + ow >= 0) & (w + ow < W))
                rows.append(valid.astype(np.float32))
    return jnp.asarray(np.stack(rows, axis=0))


def ehffb_forward(x_nchw, p):
    N, C, H, W = x_nchw.shape
    HW = H * W
    # NCHW -> (N, C, H*W): pure reshape, spatial lands on the lane axis.
    x2 = x_nchw.reshape(N, C, HW)
    masks = _build_border_masks(H, W)                           # (16, HW)

    def prep3(w):    # (3,3,Cin,Cout) -> (Cout, 9*Cin), column = (kh*3+kw)*Cin + ci
        cin, cout = w.shape[2], w.shape[3]
        return jnp.transpose(w, (3, 0, 1, 2)).reshape(cout, 9 * cin)

    def prep1(w, k):  # (k*C, Cout) -> (k, Cout, C), one (C,C) slice per concat part
        cout = w.shape[1]
        return jnp.transpose(w.reshape(k, C, cout), (0, 2, 1))

    def prepb(b):    # (1, Cout) -> (Cout, 1) so it broadcasts over lanes
        return b.reshape(-1, 1)

    weca = p["weca"]  # (1, 3)
    eca_mat = (weca[0, 1] * jnp.eye(C, dtype=jnp.float32)
               + weca[0, 0] * jnp.eye(C, k=-1, dtype=jnp.float32)
               + weca[0, 2] * jnp.eye(C, k=1, dtype=jnp.float32))

    weights = [
        prep3(p["wd1"]), prepb(p["bd1"]),
        prep3(p["w1"]), prepb(p["b1"]),
        prep3(p["w2"]), prepb(p["b2"]),
        prep1(p["w11"], 2), prepb(p["b11"]),
        prep3(p["wd2"]), prepb(p["bd2"]),
        prep1(p["w12"], 2), prepb(p["b12"]),
        prep3(p["w3"]), prepb(p["b3"]),
        prep1(p["w13"], 3), prepb(p["b13"]),
        eca_mat,
    ]

    kernel = functools.partial(_ehffb_kernel, H=H, W=W, C=C)

    w_specs = [pl.BlockSpec(w.shape, functools.partial(_zero_idx, ndim=w.ndim))
               for w in weights]

    out = pl.pallas_call(
        kernel,
        out_shape=jax.ShapeDtypeStruct((N, C, HW), jnp.float32),
        grid=(N,),
        in_specs=[pl.BlockSpec((1, C, HW), lambda n: (n, 0, 0)),
                  pl.BlockSpec((16, HW), lambda n: (0, 0))] + w_specs,
        out_specs=pl.BlockSpec((1, C, HW), lambda n: (n, 0, 0)),
        scratch_shapes=[pltpu.VMEM((9 * C, HW), jnp.float32)],
        compiler_params=pltpu.CompilerParams(
            dimension_semantics=("parallel",)),
    )(x2, masks, *weights)

    return out.reshape(N, C, H, W)


# ------------------------------ plain-JAX reference ---------------------------


def _ref_conv3x3(x, w, b, dil):
    pad = dil
    out = lax.conv_general_dilated(
        x, w, (1, 1), ((pad, pad), (pad, pad)), rhs_dilation=(dil, dil),
        dimension_numbers=("NHWC", "HWIO", "NHWC"))
    return out + b.reshape(1, 1, 1, -1)


def _ref_conv1x1(x, w, b):
    return jnp.einsum("nhwc,cd->nhwd", x, w) + b.reshape(1, 1, 1, -1)


def _ref_eca_residual(x, res, w):
    y = jnp.mean(x, axis=(1, 2))                       # (N, C)
    yp = jnp.pad(y, ((0, 0), (1, 1)))
    z = w[0, 0] * yp[:, :-2] + w[0, 1] * yp[:, 1:-1] + w[0, 2] * yp[:, 2:]
    s = jax.nn.sigmoid(z)[:, None, None, :]
    return x * s + res


def ehffb_reference(x_nchw, p):
    x = jnp.transpose(x_nchw, (0, 2, 3, 1))
    d1 = jax.nn.relu(_ref_conv3x3(x, p["wd1"], p["bd1"], 2))
    x1 = jax.nn.relu(_ref_conv3x3(d1, p["w1"], p["b1"], 1))
    x2 = jax.nn.relu(_ref_conv3x3(x1 + x, p["w2"], p["b2"], 1))
    x11 = _ref_conv1x1(jnp.concatenate([x1, x2], axis=-1), p["w11"], p["b11"])
    d2 = jax.nn.relu(_ref_conv3x3(x11, p["wd2"], p["bd2"], 2))
    x12 = _ref_conv1x1(jnp.concatenate([d1, d2], axis=-1), p["w12"], p["b12"])
    x3 = jax.nn.relu(_ref_conv3x3(x12, p["w3"], p["b3"], 1))
    x13 = _ref_conv1x1(jnp.concatenate([x1, x2, x3], axis=-1), p["w13"], p["b13"])
    out = _ref_eca_residual(x13, x, p["weca"])
    return jnp.transpose(out, (0, 3, 1, 2))


# ------------------------------ params --------------------------------------


def init_params(C, key):
    ks = jax.random.split(key, 16)

    def w3(k, cin, cout):
        return (0.1 * jax.random.normal(k, (3, 3, cin, cout))).astype(jnp.float32)

    def w1(k, cin, cout):
        return (0.1 * jax.random.normal(k, (cin, cout))).astype(jnp.float32)

    def bias(k, cout):
        return (0.05 * jax.random.normal(k, (1, cout))).astype(jnp.float32)

    return {
        "wd1": w3(ks[0], C, C), "bd1": bias(ks[1], C),
        "wd2": w3(ks[2], C, C), "bd2": bias(ks[3], C),
        "w1": w3(ks[4], C, C), "b1": bias(ks[5], C),
        "w2": w3(ks[6], C, C), "b2": bias(ks[7], C),
        "w3": w3(ks[8], C, C), "b3": bias(ks[9], C),
        "w11": w1(ks[10], 2 * C, C), "b11": bias(ks[11], C),
        "w12": w1(ks[12], 2 * C, C), "b12": bias(ks[13], C),
        "w13": w1(ks[14], 3 * C, C), "b13": bias(ks[15], C),
        # ECA conv1d(1,1,k=3,bias=False) weight, torch shape (1,1,3) -> (1,3)
        "weca": jnp.array([[0.2, 0.5, -0.3]], dtype=jnp.float32),
    }


# ------------------------------ main -----------------------------------------


if __name__ == "__main__":
    N, C, H, W = 2, 4, 16, 16            # NCHW, in_channels == out_channels
    x = jax.random.normal(jax.random.PRNGKey(0), (N, C, H, W), jnp.float32)
    params = init_params(C, jax.random.PRNGKey(42))

    fwd = jax.jit(ehffb_forward)
    out = jax.block_until_ready(fwd(x, params))
    assert out.shape == (N, C, H, W)

    ref = jax.block_until_ready(ehffb_reference(x, params))
    np.testing.assert_allclose(np.asarray(out), np.asarray(ref),
                               atol=2e-4, rtol=2e-4)

    print("KERNEL_OK")
</pallas_src>

<mosaic_0001>
module attributes {stable_mosaic.version = 11 : i64} {
  func.func @_ehffb_kernel(%arg0: i32, %arg1: memref<1x4x256xf32, #tpu.memory_space<vmem>>, %arg2: memref<16x256xf32, #tpu.memory_space<vmem>>, %arg3: memref<4x36xf32, #tpu.memory_space<vmem>>, %arg4: memref<4x1xf32, #tpu.memory_space<vmem>>, %arg5: memref<4x36xf32, #tpu.memory_space<vmem>>, %arg6: memref<4x1xf32, #tpu.memory_space<vmem>>, %arg7: memref<4x36xf32, #tpu.memory_space<vmem>>, %arg8: memref<4x1xf32, #tpu.memory_space<vmem>>, %arg9: memref<2x4x4xf32, #tpu.memory_space<vmem>>, %arg10: memref<4x1xf32, #tpu.memory_space<vmem>>, %arg11: memref<4x36xf32, #tpu.memory_space<vmem>>, %arg12: memref<4x1xf32, #tpu.memory_space<vmem>>, %arg13: memref<2x4x4xf32, #tpu.memory_space<vmem>>, %arg14: memref<4x1xf32, #tpu.memory_space<vmem>>, %arg15: memref<4x36xf32, #tpu.memory_space<vmem>>, %arg16: memref<4x1xf32, #tpu.memory_space<vmem>>, %arg17: memref<3x4x4xf32, #tpu.memory_space<vmem>>, %arg18: memref<4x1xf32, #tpu.memory_space<vmem>>, %arg19: memref<4x4xf32, #tpu.memory_space<vmem>>, %arg20: memref<1x4x256xf32, #tpu.memory_space<vmem>>, %arg21: memref<36x256xf32, #tpu.memory_space<vmem>>) attributes {dimension_semantics = [#tpu.dimension_semantics<parallel>], iteration_bounds = array<i64: 2>, scalar_prefetch = 0 : i64, scratch_operands = 1 : i64, tpu.core_type = #tpu.core_type<tc>, window_params = [{transform_indices = @transform_0, window_bounds = array<i64: 1, 4, 256>}, {pipeline_mode = #tpu.pipeline_mode<synchronous>, transform_indices = @transform_1, window_bounds = array<i64: 16, 256>}, {pipeline_mode = #tpu.pipeline_mode<synchronous>, transform_indices = @transform_2, window_bounds = array<i64: 4, 36>}, {pipeline_mode = #tpu.pipeline_mode<synchronous>, transform_indices = @transform_3, window_bounds = array<i64: 4, 1>}, {pipeline_mode = #tpu.pipeline_mode<synchronous>, transform_indices = @transform_4, window_bounds = array<i64: 4, 36>}, {pipeline_mode = #tpu.pipeline_mode<synchronous>, transform_indices = @transform_5, window_bounds = array<i64: 4, 1>}, {pipeline_mode = #tpu.pipeline_mode<synchronous>, transform_indices = @transform_6, window_bounds = array<i64: 4, 36>}, {pipeline_mode = #tpu.pipeline_mode<synchronous>, transform_indices = @transform_7, window_bounds = array<i64: 4, 1>}, {pipeline_mode = #tpu.pipeline_mode<synchronous>, transform_indices = @transform_8, window_bounds = array<i64: 2, 4, 4>}, {pipeline_mode = #tpu.pipeline_mode<synchronous>, transform_indices = @transform_9, window_bounds = array<i64: 4, 1>}, {pipeline_mode = #tpu.pipeline_mode<synchronous>, transform_indices = @transform_10, window_bounds = array<i64: 4, 36>}, {pipeline_mode = #tpu.pipeline_mode<synchronous>, transform_indices = @transform_11, window_bounds = array<i64: 4, 1>}, {pipeline_mode = #tpu.pipeline_mode<synchronous>, transform_indices = @transform_12, window_bounds = array<i64: 2, 4, 4>}, {pipeline_mode = #tpu.pipeline_mode<synchronous>, transform_indices = @transform_13, window_bounds = array<i64: 4, 1>}, {pipeline_mode = #tpu.pipeline_mode<synchronous>, transform_indices = @transform_14, window_bounds = array<i64: 4, 36>}, {pipeline_mode = #tpu.pipeline_mode<synchronous>, transform_indices = @transform_15, window_bounds = array<i64: 4, 1>}, {pipeline_mode = #tpu.pipeline_mode<synchronous>, transform_indices = @transform_16, window_bounds = array<i64: 3, 4, 4>}, {pipeline_mode = #tpu.pipeline_mode<synchronous>, transform_indices = @transform_17, window_bounds = array<i64: 4, 1>}, {pipeline_mode = #tpu.pipeline_mode<synchronous>, transform_indices = @transform_18, window_bounds = array<i64: 4, 4>}, {transform_indices = @transform_19, window_bounds = array<i64: 1, 4, 256>}]} {
    %c0 = arith.constant 0 : index
    %c0_0 = arith.constant 0 : index
    %c0_1 = arith.constant 0 : index
    %0 = vector.load %arg1[%c0, %c0_0, %c0_1] : memref<1x4x256xf32, #tpu.memory_space<vmem>>, vector<1x4x256xf32>
    %1 = vector.shape_cast %0 : vector<1x4x256xf32> to vector<4x256xf32>
    %c34_i32 = arith.constant 34 : i32
    %2 = tpu.dynamic_rotate %1 by %c34_i32 dim 1 : vector<4x256xf32>, i32 -> vector<4x256xf32>
    %c8 = arith.constant 8 : index
    %c0_2 = arith.constant 0 : index
    %3 = vector.load %arg2[%c8, %c0_2] : memref<16x256xf32, #tpu.memory_space<vmem>>, vector<1x256xf32>
    %4 = vector.broadcast %3 : vector<1x256xf32> to vector<4x256xf32>
    %5 = arith.mulf %2, %4 : vector<4x256xf32>
    %c0_3 = arith.constant 0 : index
    %c0_4 = arith.constant 0 : index
    %6 = vector.load %arg21[%c0_3, %c0_4] : memref<36x256xf32, #tpu.memory_space<vmem>>, vector<4x256xf32>
    tpu.vector_store %arg21[%c0_3, %c0_4], %5 {strides = array<i32>} : memref<36x256xf32, #tpu.memory_space<vmem>>, vector<4x256xf32>,
    %c32_i32 = arith.constant 32 : i32
    %7 = tpu.dynamic_rotate %1 by %c32_i32 dim 1 : vector<4x256xf32>, i32 -> vector<4x256xf32>
    %c9 = arith.constant 9 : index
    %c0_5 = arith.constant 0 : index
    %8 = vector.load %arg2[%c9, %c0_5] : memref<16x256xf32, #tpu.memory_space<vmem>>, vector<1x256xf32>
    %9 = vector.broadcast %8 : vector<1x256xf32> to vector<4x256xf32>
    %10 = arith.mulf %7, %9 : vector<4x256xf32>
    %c4 = arith.constant 4 : index
    %c0_6 = arith.constant 0 : index
    %11 = vector.load %arg21[%c4, %c0_6] : memref<36x256xf32, #tpu.memory_space<vmem>>, vector<4x256xf32>
    tpu.vector_store %arg21[%c4, %c0_6], %10 {strides = array<i32>} : memref<36x256xf32, #tpu.memory_space<vmem>>, vector<4x256xf32>,
    %c30_i32 = arith.constant 30 : i32
    %12 = tpu.dynamic_rotate %1 by %c30_i32 dim 1 : vector<4x256xf32>, i32 -> vector<4x256xf32>
    %c10 = arith.constant 10 : index
    %c0_7 = arith.constant 0 : index
    %13 = vector.load %arg2[%c10, %c0_7] : memref<16x256xf32, #tpu.memory_space<vmem>>, vector<1x256xf32>
    %14 = vector.broadcast %13 : vector<1x256xf32> to vector<4x256xf32>
    %15 = arith.mulf %12, %14 : vector<4x256xf32>
    %c8_8 = arith.constant 8 : index
    %c0_9 = arith.constant 0 : index
    %16 = vector.load %arg21[%c8_8, %c0_9] : memref<36x256xf32, #tpu.memory_space<vmem>>, vector<4x256xf32>
    tpu.vector_store %arg21[%c8_8, %c0_9], %15 {strides = array<i32>} : memref<36x256xf32, #tpu.memory_space<vmem>>, vector<4x256xf32>,
    %c2_i32 = arith.constant 2 : i32
    %17 = tpu.dynamic_rotate %1 by %c2_i32 dim 1 : vector<4x256xf32>, i32 -> vector<4x256xf32>
    %c11 = arith.constant 11 : index
    %c0_10 = arith.constant 0 : index
    %18 = vector.load %arg2[%c11, %c0_10] : memref<16x256xf32, #tpu.memory_space<vmem>>, vector<1x256xf32>
    %19 = vector.broadcast %18 : vector<1x256xf32> to vector<4x256xf32>
    %20 = arith.mulf %17, %19 : vector<4x256xf32>
    %c12 = arith.constant 12 : index
    %c0_11 = arith.constant 0 : index
    %21 = vector.load %arg21[%c12, %c0_11] : memref<36x256xf32, #tpu.memory_space<vmem>>, vector<4x256xf32>
    tpu.vector_store %arg21[%c12, %c0_11], %20 {strides = array<i32>} : memref<36x256xf32, #tpu.memory_space<vmem>>, vector<4x256xf32>,
    %c16 = arith.constant 16 : index
    %c0_12 = arith.constant 0 : index
    %22 = vector.load %arg21[%c16, %c0_12] : memref<36x256xf32, #tpu.memory_space<vmem>>, vector<4x256xf32>
    tpu.vector_store %arg21[%c16, %c0_12], %1 {strides = array<i32>} : memref<36x256xf32, #tpu.memory_space<vmem>>, vector<4x256xf32>,
    %c254_i32 = arith.constant 254 : i32
    %23 = tpu.dynamic_rotate %1 by %c254_i32 dim 1 : vector<4x256xf32>, i32 -> vector<4x256xf32>
    %c12_13 = arith.constant 12 : index
    %c0_14 = arith.constant 0 : index
    %24 = vector.load %arg2[%c12_13, %c0_14] : memref<16x256xf32, #tpu.memory_space<vmem>>, vector<1x256xf32>
    %25 = vector.broadcast %24 : vector<1x256xf32> to vector<4x256xf32>
    %26 = arith.mulf %23, %25 : vector<4x256xf32>
    %c20 = arith.constant 20 : index
    %c0_15 = arith.constant 0 : index
    %27 = vector.load %arg21[%c20, %c0_15] : memref<36x256xf32, #tpu.memory_space<vmem>>, vector<4x256xf32>
    tpu.vector_store %arg21[%c20, %c0_15], %26 {strides = array<i32>} : memref<36x256xf32, #tpu.memory_space<vmem>>, vector<4x256xf32>,
    %c226_i32 = arith.constant 226 : i32
    %28 = tpu.dynamic_rotate %1 by %c226_i32 dim 1 : vector<4x256xf32>, i32 -> vector<4x256xf32>
    %c13 = arith.constant 13 : index
    %c0_16 = arith.constant 0 : index
    %29 = vector.load %arg2[%c13, %c0_16] : memref<16x256xf32, #tpu.memory_space<vmem>>, vector<1x256xf32>
    %30 = vector.broadcast %29 : vector<1x256xf32> to vector<4x256xf32>
    %31 = arith.mulf %28, %30 : vector<4x256xf32>
    %c24 = arith.constant 24 : index
    %c0_17 = arith.constant 0 : index
    %32 = vector.load %arg21[%c24, %c0_17] : memref<36x256xf32, #tpu.memory_space<vmem>>, vector<4x256xf32>
    tpu.vector_store %arg21[%c24, %c0_17], %31 {strides = array<i32>} : memref<36x256xf32, #tpu.memory_space<vmem>>, vector<4x256xf32>,
    %c224_i32 = arith.constant 224 : i32
    %33 = tpu.dynamic_rotate %1 by %c224_i32 dim 1 : vector<4x256xf32>, i32 -> vector<4x256xf32>
    %c14 = arith.constant 14 : index
    %c0_18 = arith.constant 0 : index
    %34 = vector.load %arg2[%c14, %c0_18] : memref<16x256xf32, #tpu.memory_space<vmem>>, vector<1x256xf32>
    %35 = vector.broadcast %34 : vector<1x256xf32> to vector<4x256xf32>
    %36 = arith.mulf %33, %35 : vector<4x256xf32>
    %c28 = arith.constant 28 : index
    %c0_19 = arith.constant 0 : index
    %37 = vector.load %arg21[%c28, %c0_19] : memref<36x256xf32, #tpu.memory_space<vmem>>, vector<4x256xf32>
    tpu.vector_store %arg21[%c28, %c0_19], %36 {strides = array<i32>} : memref<36x256xf32, #tpu.memory_space<vmem>>, vector<4x256xf32>,
    %c222_i32 = arith.constant 222 : i32
    %38 = tpu.dynamic_rotate %1 by %c222_i32 dim 1 : vector<4x256xf32>, i32 -> vector<4x256xf32>
    %c15 = arith.constant 15 : index
    %c0_20 = arith.constant 0 : index
    %39 = vector.load %arg2[%c15, %c0_20] : memref<16x256xf32, #tpu.memory_space<vmem>>, vector<1x256xf32>
    %40 = vector.broadcast %39 : vector<1x256xf32> to vector<4x256xf32>
    %41 = arith.mulf %38, %40 : vector<4x256xf32>
    %c32 = arith.constant 32 : index
    %c0_21 = arith.constant 0 : index
    %42 = vector.load %arg21[%c32, %c0_21] : memref<36x256xf32, #tpu.memory_space<vmem>>, vector<4x256xf32>
    tpu.vector_store %arg21[%c32, %c0_21], %41 {strides = array<i32>} : memref<36x256xf32, #tpu.memory_space<vmem>>, vector<4x256xf32>,
    %c0_22 = arith.constant 0 : index
    %c0_23 = arith.constant 0 : index
    %43 = vector.load %arg3[%c0_22, %c0_23] : memref<4x36xf32, #tpu.memory_space<vmem>>, vector<4x36xf32>
    %c0_24 = arith.constant 0 : index
    %c0_25 = arith.constant 0 : index
    %44 = vector.load %arg21[%c0_24, %c0_25] : memref<36x256xf32, #tpu.memory_space<vmem>>, vector<36x256xf32>
    %cst = arith.constant dense<0.000000e+00> : vector<4x256xf32>
    %45 = tpu.matmul %43, %44, %cst {dimension_numbers = #tpu.dot_dimension_numbers<[1], [0], [0], [1], [0, 0, 1, 1], [], []>} : vector<4x36xf32>, vector<36x256xf32>, vector<4x256xf32> -> vector<4x256xf32>
    %c0_26 = arith.constant 0 : index
    %c0_27 = arith.constant 0 : index
    %46 = vector.load %arg4[%c0_26, %c0_27] : memref<4x1xf32, #tpu.memory_space<vmem>>, vector<4x1xf32>
    %47 = vector.broadcast %46 : vector<4x1xf32> to vector<4x256xf32>
    %48 = arith.addf %45, %47 : vector<4x256xf32>
    %cst_28 = arith.constant 0.000000e+00 : f32
    %49 = vector.broadcast %cst_28 : f32 to vector<4x256xf32>
    %50 = arith.maximumf %48, %49 : vector<4x256xf32>
    %c17_i32 = arith.constant 17 : i32
    %51 = tpu.dynamic_rotate %50 by %c17_i32 dim 1 : vector<4x256xf32>, i32 -> vector<4x256xf32>
    %c0_29 = arith.constant 0 : index
    %c0_30 = arith.constant 0 : index
    %52 = vector.load %arg2[%c0_29, %c0_30] : memref<16x256xf32, #tpu.memory_space<vmem>>, vector<1x256xf32>
    %53 = vector.broadcast %52 : vector<1x256xf32> to vector<4x256xf32>
    %54 = arith.mulf %51, %53 : vector<4x256xf32>
    %c0_31 = arith.constant 0 : index
    %c0_32 = arith.constant 0 : index
    %55 = vector.load %arg21[%c0_31, %c0_32] : memref<36x256xf32, #tpu.memory_space<vmem>>, vector<4x256xf32>
    tpu.vector_store %arg21[%c0_31, %c0_32], %54 {strides = array<i32>} : memref<36x256xf32, #tpu.memory_space<vmem>>, vector<4x256xf32>,
    %c16_i32 = arith.constant 16 : i32
    %56 = tpu.dynamic_rotate %50 by %c16_i32 dim 1 : vector<4x256xf32>, i32 -> vector<4x256xf32>
    %c1 = arith.constant 1 : index
    %c0_33 = arith.constant 0 : index
    %57 = vector.load %arg2[%c1, %c0_33] : memref<16x256xf32, #tpu.memory_space<vmem>>, vector<1x256xf32>
    %58 = vector.broadcast %57 : vector<1x256xf32> to vector<4x256xf32>
    %59 = arith.mulf %56, %58 : vector<4x256xf32>
    %c4_34 = arith.constant 4 : index
    %c0_35 = arith.constant 0 : index
    %60 = vector.load %arg21[%c4_34, %c0_35] : memref<36x256xf32, #tpu.memory_space<vmem>>, vector<4x256xf32>
    tpu.vector_store %arg21[%c4_34, %c0_35], %59 {strides = array<i32>} : memref<36x256xf32, #tpu.memory_space<vmem>>, vector<4x256xf32>,
    %c15_i32 = arith.constant 15 : i32
    %61 = tpu.dynamic_rotate %50 by %c15_i32 dim 1 : vector<4x256xf32>, i32 -> vector<4x256xf32>
    %c2 = arith.constant 2 : index
    %c0_36 = arith.constant 0 : index
    %62 = vector.load %arg2[%c2, %c0_36] : memref<16x256xf32, #tpu.memory_space<vmem>>, vector<1x256xf32>
    %63 = vector.broadcast %62 : vector<1x256xf32> to vector<4x256xf32>
    %64 = arith.mulf %61, %63 : vector<4x256xf32>
    %c8_37 = arith.constant 8 : index
    %c0_38 = arith.constant 0 : index
    %65 = vector.load %arg21[%c8_37, %c0_38] : memref<36x256xf32, #tpu.memory_space<vmem>>, vector<4x256xf32>
    tpu.vector_store %arg21[%c8_37, %c0_38], %64 {strides = array<i32>} : memref<36x256xf32, #tpu.memory_space<vmem>>, vector<4x256xf32>,
    %c1_i32 = arith.constant 1 : i32
    %66 = tpu.dynamic_rotate %50 by %c1_i32 dim 1 : vector<4x256xf32>, i32 -> vector<4x256xf32>
    %c3 = arith.constant 3 : index
    %c0_39 = arith.constant 0 : index
    %67 = vector.load %arg2[%c3, %c0_39] : memref<16x256xf32, #tpu.memory_space<vmem>>, vector<1x256xf32>
    %68 = vector.broadcast %67 : vector<1x256xf32> to vector<4x256xf32>
    %69 = arith.mulf %66, %68 : vector<4x256xf32>
    %c12_40 = arith.constant 12 : index
    %c0_41 = arith.constant 0 : index
    %70 = vector.load %arg21[%c12_40, %c0_41] : memref<36x256xf32, #tpu.memory_space<vmem>>, vector<4x256xf32>
    tpu.vector_store %arg21[%c12_40, %c0_41], %69 {strides = array<i32>} : memref<36x256xf32, #tpu.memory_space<vmem>>, vector<4x256xf32>,
    %c16_42 = arith.constant 16 : index
    %c0_43 = arith.constant 0 : index
    %71 = vector.load %arg21[%c16_42, %c0_43] : memref<36x256xf32, #tpu.memory_space<vmem>>, vector<4x256xf32>
    tpu.vector_store %arg21[%c16_42, %c0_43], %50 {strides = array<i32>} : memref<36x256xf32, #tpu.memory_space<vmem>>, vector<4x256xf32>,
    %c255_i32 = arith.constant 255 : i32
    %72 = tpu.dynamic_rotate %50 by %c255_i32 dim 1 : vector<4x256xf32>, i32 -> vector<4x256xf32>
    %c4_44 = arith.constant 4 : index
    %c0_45 = arith.constant 0 : index
    %73 = vector.load %arg2[%c4_44, %c0_45] : memref<16x256xf32, #tpu.memory_space<vmem>>, vector<1x256xf32>
    %74 = vector.broadcast %73 : vector<1x256xf32> to vector<4x256xf32>
    %75 = arith.mulf %72, %74 : vector<4x256xf32>
    %c20_46 = arith.constant 20 : index
    %c0_47 = arith.constant 0 : index
    %76 = vector.load %arg21[%c20_46, %c0_47] : memref<36x256xf32, #tpu.memory_space<vmem>>, vector<4x256xf32>
    tpu.vector_store %arg21[%c20_46, %c0_47], %75 {strides = array<i32>} : memref<36x256xf32, #tpu.memory_space<vmem>>, vector<4x256xf32>,
    %c241_i32 = arith.constant 241 : i32
    %77 = tpu.dynamic_rotate %50 by %c241_i32 dim 1 : vector<4x256xf32>, i32 -> vector<4x256xf32>
    %c5 = arith.constant 5 : index
    %c0_48 = arith.constant 0 : index
    %78 = vector.load %arg2[%c5, %c0_48] : memref<16x256xf32, #tpu.memory_space<vmem>>, vector<1x256xf32>
    %79 = vector.broadcast %78 : vector<1x256xf32> to vector<4x256xf32>
    %80 = arith.mulf %77, %79 : vector<4x256xf32>
    %c24_49 = arith.constant 24 : index
    %c0_50 = arith.constant 0 : index
    %81 = vector.load %arg21[%c24_49, %c0_50] : memref<36x256xf32, #tpu.memory_space<vmem>>, vector<4x256xf32>
    tpu.vector_store %arg21[%c24_49, %c0_50], %80 {strides = array<i32>} : memref<36x256xf32, #tpu.memory_space<vmem>>, vector<4x256xf32>,
    %c240_i32 = arith.constant 240 : i32
    %82 = tpu.dynamic_rotate %50 by %c240_i32 dim 1 : vector<4x256xf32>, i32 -> vector<4x256xf32>
    %c6 = arith.constant 6 : index
    %c0_51 = arith.constant 0 : index
    %83 = vector.load %arg2[%c6, %c0_51] : memref<16x256xf32, #tpu.memory_space<vmem>>, vector<1x256xf32>
    %84 = vector.broadcast %83 : vector<1x256xf32> to vector<4x256xf32>
    %85 = arith.mulf %82, %84 : vector<4x256xf32>
    %c28_52 = arith.constant 28 : index
    %c0_53 = arith.constant 0 : index
    %86 = vector.load %arg21[%c28_52, %c0_53] : memref<36x256xf32, #tpu.memory_space<vmem>>, vector<4x256xf32>
    tpu.vector_store %arg21[%c28_52, %c0_53], %85 {strides = array<i32>} : memref<36x256xf32, #tpu.memory_space<vmem>>, vector<4x256xf32>,
    %c239_i32 = arith.constant 239 : i32
    %87 = tpu.dynamic_rotate %50 by %c239_i32 dim 1 : vector<4x256xf32>, i32 -> vector<4x256xf32>
    %c7 = arith.constant 7 : index
    %c0_54 = arith.constant 0 : index
    %88 = vector.load %arg2[%c7, %c0_54] : memref<16x256xf32, #tpu.memory_space<vmem>>, vector<1x256xf32>
    %89 = vector.broadcast %88 : vector<1x256xf32> to vector<4x256xf32>
    %90 = arith.mulf %87, %89 : vector<4x256xf32>
    %c32_55 = arith.constant 32 : index
    %c0_56 = arith.constant 0 : index
    %91 = vector.load %arg21[%c32_55, %c0_56] : memref<36x256xf32, #tpu.memory_space<vmem>>, vector<4x256xf32>
    tpu.vector_store %arg21[%c32_55, %c0_56], %90 {strides = array<i32>} : memref<36x256xf32, #tpu.memory_space<vmem>>, vector<4x256xf32>,
    %c0_57 = arith.constant 0 : index
    %c0_58 = arith.constant 0 : index
    %92 = vector.load %arg5[%c0_57, %c0_58] : memref<4x36xf32, #tpu.memory_space<vmem>>, vector<4x36xf32>
    %c0_59 = arith.constant 0 : index
    %c0_60 = arith.constant 0 : index
    %93 = vector.load %arg21[%c0_59, %c0_60] : memref<36x256xf32, #tpu.memory_space<vmem>>, vector<36x256xf32>
    %cst_61 = arith.constant dense<0.000000e+00> : vector<4x256xf32>
    %94 = tpu.matmul %92, %93, %cst_61 {dimension_numbers = #tpu.dot_dimension_numbers<[1], [0], [0], [1], [0, 0, 1, 1], [], []>} : vector<4x36xf32>, vector<36x256xf32>, vector<4x256xf32> -> vector<4x256xf32>
    %c0_62 = arith.constant 0 : index
    %c0_63 = arith.constant 0 : index
    %95 = vector.load %arg6[%c0_62, %c0_63] : memref<4x1xf32, #tpu.memory_space<vmem>>, vector<4x1xf32>
    %96 = vector.broadcast %95 : vector<4x1xf32> to vector<4x256xf32>
    %97 = arith.addf %94, %96 : vector<4x256xf32>
    %cst_64 = arith.constant 0.000000e+00 : f32
    %98 = vector.broadcast %cst_64 : f32 to vector<4x256xf32>
    %99 = arith.maximumf %97, %98 : vector<4x256xf32>
    %100 = arith.addf %99, %1 : vector<4x256xf32>
    %c17_i32_65 = arith.constant 17 : i32
    %101 = tpu.dynamic_rotate %100 by %c17_i32_65 dim 1 : vector<4x256xf32>, i32 -> vector<4x256xf32>
    %c0_66 = arith.constant 0 : index
    %c0_67 = arith.constant 0 : index
    %102 = vector.load %arg2[%c0_66, %c0_67] : memref<16x256xf32, #tpu.memory_space<vmem>>, vector<1x256xf32>
    %103 = vector.broadcast %102 : vector<1x256xf32> to vector<4x256xf32>
    %104 = arith.mulf %101, %103 : vector<4x256xf32>
    %c0_68 = arith.constant 0 : index
    %c0_69 = arith.constant 0 : index
    %105 = vector.load %arg21[%c0_68, %c0_69] : memref<36x256xf32, #tpu.memory_space<vmem>>, vector<4x256xf32>
    tpu.vector_store %arg21[%c0_68, %c0_69], %104 {strides = array<i32>} : memref<36x256xf32, #tpu.memory_space<vmem>>, vector<4x256xf32>,
    %c16_i32_70 = arith.constant 16 : i32
    %106 = tpu.dynamic_rotate %100 by %c16_i32_70 dim 1 : vector<4x256xf32>, i32 -> vector<4x256xf32>
    %c1_71 = arith.constant 1 : index
    %c0_72 = arith.constant 0 : index
    %107 = vector.load %arg2[%c1_71, %c0_72] : memref<16x256xf32, #tpu.memory_space<vmem>>, vector<1x256xf32>
    %108 = vector.broadcast %107 : vector<1x256xf32> to vector<4x256xf32>
    %109 = arith.mulf %106, %108 : vector<4x256xf32>
    %c4_73 = arith.constant 4 : index
    %c0_74 = arith.constant 0 : index
    %110 = vector.load %arg21[%c4_73, %c0_74] : memref<36x256xf32, #tpu.memory_space<vmem>>, vector<4x256xf32>
    tpu.vector_store %arg21[%c4_73, %c0_74], %109 {strides = array<i32>} : memref<36x256xf32, #tpu.memory_space<vmem>>, vector<4x256xf32>,
    %c15_i32_75 = arith.constant 15 : i32
    %111 = tpu.dynamic_rotate %100 by %c15_i32_75 dim 1 : vector<4x256xf32>, i32 -> vector<4x256xf32>
    %c2_76 = arith.constant 2 : index
    %c0_77 = arith.constant 0 : index
    %112 = vector.load %arg2[%c2_76, %c0_77] : memref<16x256xf32, #tpu.memory_space<vmem>>, vector<1x256xf32>
    %113 = vector.broadcast %112 : vector<1x256xf32> to vector<4x256xf32>
    %114 = arith.mulf %111, %113 : vector<4x256xf32>
    %c8_78 = arith.constant 8 : index
    %c0_79 = arith.constant 0 : index
    %115 = vector.load %arg21[%c8_78, %c0_79] : memref<36x256xf32, #tpu.memory_space<vmem>>, vector<4x256xf32>
    tpu.vector_store %arg21[%c8_78, %c0_79], %114 {strides = array<i32>} : memref<36x256xf32, #tpu.memory_space<vmem>>, vector<4x256xf32>,
    %c1_i32_80 = arith.constant 1 : i32
    %116 = tpu.dynamic_rotate %100 by %c1_i32_80 dim 1 : vector<4x256xf32>, i32 -> vector<4x256xf32>
    %c3_81 = arith.constant 3 : index
    %c0_82 = arith.constant 0 : index
    %117 = vector.load %arg2[%c3_81, %c0_82] : memref<16x256xf32, #tpu.memory_space<vmem>>, vector<1x256xf32>
    %118 = vector.broadcast %117 : vector<1x256xf32> to vector<4x256xf32>
    %119 = arith.mulf %116, %118 : vector<4x256xf32>
    %c12_83 = arith.constant 12 : index
    %c0_84 = arith.constant 0 : index
    %120 = vector.load %arg21[%c12_83, %c0_84] : memref<36x256xf32, #tpu.memory_space<vmem>>, vector<4x256xf32>
    tpu.vector_store %arg21[%c12_83, %c0_84], %119 {strides = array<i32>} : memref<36x256xf32, #tpu.memory_space<vmem>>, vector<4x256xf32>,
    %c16_85 = arith.constant 16 : index
    %c0_86 = arith.constant 0 : index
    %121 = vector.load %arg21[%c16_85, %c0_86] : memref<36x256xf32, #tpu.memory_space<vmem>>, vector<4x256xf32>
    tpu.vector_store %arg21[%c16_85, %c0_86], %100 {strides = array<i32>} : memref<36x256xf32, #tpu.memory_space<vmem>>, vector<4x256xf32>,
    %c255_i32_87 = arith.constant 255 : i32
    %122 = tpu.dynamic_rotate %100 by %c255_i32_87 dim 1 : vector<4x256xf32>, i32 -> vector<4x256xf32>
    %c4_88 = arith.constant 4 : index
    %c0_89 = arith.constant 0 : index
    %123 = vector.load %arg2[%c4_88, %c0_89] : memref<16x256xf32, #tpu.memory_space<vmem>>, vector<1x256xf32>
    %124 = vector.broadcast %123 : vector<1x256xf32> to vector<4x256xf32>
    %125 = arith.mulf %122, %124 : vector<4x256xf32>
    %c20_90 = arith.constant 20 : index
    %c0_91 = arith.constant 0 : index
    %126 = vector.load %arg21[%c20_90, %c0_91] : memref<36x256xf32, #tpu.memory_space<vmem>>, vector<4x256xf32>
    tpu.vector_store %arg21[%c20_90, %c0_91], %125 {strides = array<i32>} : memref<36x256xf32, #tpu.memory_space<vmem>>, vector<4x256xf32>,
    %c241_i32_92 = arith.constant 241 : i32
    %127 = tpu.dynamic_rotate %100 by %c241_i32_92 dim 1 : vector<4x256xf32>, i32 -> vector<4x256xf32>
    %c5_93 = arith.constant 5 : index
    %c0_94 = arith.constant 0 : index
    %128 = vector.load %arg2[%c5_93, %c0_94] : memref<16x256xf32, #tpu.memory_space<vmem>>, vector<1x256xf32>
    %129 = vector.broadcast %128 : vector<1x256xf32> to vector<4x256xf32>
    %130 = arith.mulf %127, %129 : vector<4x256xf32>
    %c24_95 = arith.constant 24 : index
    %c0_96 = arith.constant 0 : index
    %131 = vector.load %arg21[%c24_95, %c0_96] : memref<36x256xf32, #tpu.memory_space<vmem>>, vector<4x256xf32>
    tpu.vector_store %arg21[%c24_95, %c0_96], %130 {strides = array<i32>} : memref<36x256xf32, #tpu.memory_space<vmem>>, vector<4x256xf32>,
    %c240_i32_97 = arith.constant 240 : i32
    %132 = tpu.dynamic_rotate %100 by %c240_i32_97 dim 1 : vector<4x256xf32>, i32 -> vector<4x256xf32>
    %c6_98 = arith.constant 6 : index
    %c0_99 = arith.constant 0 : index
    %133 = vector.load %arg2[%c6_98, %c0_99] : memref<16x256xf32, #tpu.memory_space<vmem>>, vector<1x256xf32>
    %134 = vector.broadcast %133 : vector<1x256xf32> to vector<4x256xf32>
    %135 = arith.mulf %132, %134 : vector<4x256xf32>
    %c28_100 = arith.constant 28 : index
    %c0_101 = arith.constant 0 : index
    %136 = vector.load %arg21[%c28_100, %c0_101] : memref<36x256xf32, #tpu.memory_space<vmem>>, vector<4x256xf32>
    tpu.vector_store %arg21[%c28_100, %c0_101], %135 {strides = array<i32>} : memref<36x256xf32, #tpu.memory_space<vmem>>, vector<4x256xf32>,
    %c239_i32_102 = arith.constant 239 : i32
    %137 = tpu.dynamic_rotate %100 by %c239_i32_102 dim 1 : vector<4x256xf32>, i32 -> vector<4x256xf32>
    %c7_103 = arith.constant 7 : index
    %c0_104 = arith.constant 0 : index
    %138 = vector.load %arg2[%c7_103, %c0_104] : memref<16x256xf32, #tpu.memory_space<vmem>>, vector<1x256xf32>
    %139 = vector.broadcast %138 : vector<1x256xf32> to vector<4x256xf32>
    %140 = arith.mulf %137, %139 : vector<4x256xf32>
    %c32_105 = arith.constant 32 : index
    %c0_106 = arith.constant 0 : index
    %141 = vector.load %arg21[%c32_105, %c0_106] : memref<36x256xf32, #tpu.memory_space<vmem>>, vector<4x256xf32>
    tpu.vector_store %arg21[%c32_105, %c0_106], %140 {strides = array<i32>} : memref<36x256xf32, #tpu.memory_space<vmem>>, vector<4x256xf32>,
    %c0_107 = arith.constant 0 : index
    %c0_108 = arith.constant 0 : index
    %142 = vector.load %arg7[%c0_107, %c0_108] : memref<4x36xf32, #tpu.memory_space<vmem>>, vector<4x36xf32>
    %c0_109 = arith.constant 0 : index
    %c0_110 = arith.constant 0 : index
    %143 = vector.load %arg21[%c0_109, %c0_110] : memref<36x256xf32, #tpu.memory_space<vmem>>, vector<36x256xf32>
    %cst_111 = arith.constant dense<0.000000e+00> : vector<4x256xf32>
    %144 = tpu.matmul %142, %143, %cst_111 {dimension_numbers = #tpu.dot_dimension_numbers<[1], [0], [0], [1], [0, 0, 1, 1], [], []>} : vector<4x36xf32>, vector<36x256xf32>, vector<4x256xf32> -> vector<4x256xf32>
    %c0_112 = arith.constant 0 : index
    %c0_113 = arith.constant 0 : index
    %145 = vector.load %arg8[%c0_112, %c0_113] : memref<4x1xf32, #tpu.memory_space<vmem>>, vector<4x1xf32>
    %146 = vector.broadcast %145 : vector<4x1xf32> to vector<4x256xf32>
    %147 = arith.addf %144, %146 : vector<4x256xf32>
    %cst_114 = arith.constant 0.000000e+00 : f32
    %148 = vector.broadcast %cst_114 : f32 to vector<4x256xf32>
    %149 = arith.maximumf %147, %148 : vector<4x256xf32>
    %c0_115 = arith.constant 0 : index
    %c0_116 = arith.constant 0 : index
    %c0_117 = arith.constant 0 : index
    %150 = vector.load %arg9[%c0_115, %c0_116, %c0_117] : memref<2x4x4xf32, #tpu.memory_space<vmem>>, vector<1x4x4xf32>
    %151 = vector.shape_cast %150 : vector<1x4x4xf32> to vector<4x4xf32>
    %cst_118 = arith.constant dense<0.000000e+00> : vector<4x256xf32>
    %152 = tpu.matmul %151, %99, %cst_118 {dimension_numbers = #tpu.dot_dimension_numbers<[1], [0], [0], [1], [0, 0, 1, 1], [], []>} : vector<4x4xf32>, vector<4x256xf32>, vector<4x256xf32> -> vector<4x256xf32>
    %c1_119 = arith.constant 1 : index
    %c0_120 = arith.constant 0 : index
    %c0_121 = arith.constant 0 : index
    %153 = vector.load %arg9[%c1_119, %c0_120, %c0_121] : memref<2x4x4xf32, #tpu.memory_space<vmem>>, vector<1x4x4xf32>
    %154 = vector.shape_cast %153 : vector<1x4x4xf32> to vector<4x4xf32>
    %cst_122 = arith.constant dense<0.000000e+00> : vector<4x256xf32>
    %155 = tpu.matmul %154, %149, %cst_122 {dimension_numbers = #tpu.dot_dimension_numbers<[1], [0], [0], [1], [0, 0, 1, 1], [], []>} : vector<4x4xf32>, vector<4x256xf32>, vector<4x256xf32> -> vector<4x256xf32>
    %156 = arith.addf %152, %155 : vector<4x256xf32>
    %c0_123 = arith.constant 0 : index
    %c0_124 = arith.constant 0 : index
    %157 = vector.load %arg10[%c0_123, %c0_124] : memref<4x1xf32, #tpu.memory_space<vmem>>, vector<4x1xf32>
    %158 = vector.broadcast %157 : vector<4x1xf32> to vector<4x256xf32>
    %159 = arith.addf %156, %158 : vector<4x256xf32>
    %c34_i32_125 = arith.constant 34 : i32
    %160 = tpu.dynamic_rotate %159 by %c34_i32_125 dim 1 : vector<4x256xf32>, i32 -> vector<4x256xf32>
    %c8_126 = arith.constant 8 : index
    %c0_127 = arith.constant 0 : index
    %161 = vector.load %arg2[%c8_126, %c0_127] : memref<16x256xf32, #tpu.memory_space<vmem>>, vector<1x256xf32>
    %162 = vector.broadcast %161 : vector<1x256xf32> to vector<4x256xf32>
    %163 = arith.mulf %160, %162 : vector<4x256xf32>
    %c0_128 = arith.constant 0 : index
    %c0_129 = arith.constant 0 : index
    %164 = vector.load %arg21[%c0_128, %c0_129] : memref<36x256xf32, #tpu.memory_space<vmem>>, vector<4x256xf32>
    tpu.vector_store %arg21[%c0_128, %c0_129], %163 {strides = array<i32>} : memref<36x256xf32, #tpu.memory_space<vmem>>, vector<4x256xf32>,
    %c32_i32_130 = arith.constant 32 : i32
    %165 = tpu.dynamic_rotate %159 by %c32_i32_130 dim 1 : vector<4x256xf32>, i32 -> vector<4x256xf32>
    %c9_131 = arith.constant 9 : index
    %c0_132 = arith.constant 0 : index
    %166 = vector.load %arg2[%c9_131, %c0_132] : memref<16x256xf32, #tpu.memory_space<vmem>>, vector<1x256xf32>
    %167 = vector.broadcast %166 : vector<1x256xf32> to vector<4x256xf32>
    %168 = arith.mulf %165, %167 : vector<4x256xf32>
    %c4_133 = arith.constant 4 : index
    %c0_134 = arith.constant 0 : index
    %169 = vector.load %arg21[%c4_133, %c0_134] : memref<36x256xf32, #tpu.memory_space<vmem>>, vector<4x256xf32>
    tpu.vector_store %arg21[%c4_133, %c0_134], %168 {strides = array<i32>} : memref<36x256xf32, #tpu.memory_space<vmem>>, vector<4x256xf32>,
    %c30_i32_135 = arith.constant 30 : i32
    %170 = tpu.dynamic_rotate %159 by %c30_i32_135 dim 1 : vector<4x256xf32>, i32 -> vector<4x256xf32>
    %c10_136 = arith.constant 10 : index
    %c0_137 = arith.constant 0 : index
    %171 = vector.load %arg2[%c10_136, %c0_137] : memref<16x256xf32, #tpu.memory_space<vmem>>, vector<1x256xf32>
    %172 = vector.broadcast %171 : vector<1x256xf32> to vector<4x256xf32>
    %173 = arith.mulf %170, %172 : vector<4x256xf32>
    %c8_138 = arith.constant 8 : index
    %c0_139 = arith.constant 0 : index
    %174 = vector.load %arg21[%c8_138, %c0_139] : memref<36x256xf32, #tpu.memory_space<vmem>>, vector<4x256xf32>
    tpu.vector_store %arg21[%c8_138, %c0_139], %173 {strides = array<i32>} : memref<36x256xf32, #tpu.memory_space<vmem>>, vector<4x256xf32>,
    %c2_i32_140 = arith.constant 2 : i32
    %175 = tpu.dynamic_rotate %159 by %c2_i32_140 dim 1 : vector<4x256xf32>, i32 -> vector<4x256xf32>
    %c11_141 = arith.constant 11 : index
    %c0_142 = arith.constant 0 : index
    %176 = vector.load %arg2[%c11_141, %c0_142] : memref<16x256xf32, #tpu.memory_space<vmem>>, vector<1x256xf32>
    %177 = vector.broadcast %176 : vector<1x256xf32> to vector<4x256xf32>
    %178 = arith.mulf %175, %177 : vector<4x256xf32>
    %c12_143 = arith.constant 12 : index
    %c0_144 = arith.constant 0 : index
    %179 = vector.load %arg21[%c12_143, %c0_144] : memref<36x256xf32, #tpu.memory_space<vmem>>, vector<4x256xf32>
    tpu.vector_store %arg21[%c12_143, %c0_144], %178 {strides = array<i32>} : memref<36x256xf32, #tpu.memory_space<vmem>>, vector<4x256xf32>,
    %c16_145 = arith.constant 16 : index
    %c0_146 = arith.constant 0 : index
    %180 = vector.load %arg21[%c16_145, %c0_146] : memref<36x256xf32, #tpu.memory_space<vmem>>, vector<4x256xf32>
    tpu.vector_store %arg21[%c16_145, %c0_146], %159 {strides = array<i32>} : memref<36x256xf32, #tpu.memory_space<vmem>>, vector<4x256xf32>,
    %c254_i32_147 = arith.constant 254 : i32
    %181 = tpu.dynamic_rotate %159 by %c254_i32_147 dim 1 : vector<4x256xf32>, i32 -> vector<4x256xf32>
    %c12_148 = arith.constant 12 : index
    %c0_149 = arith.constant 0 : index
    %182 = vector.load %arg2[%c12_148, %c0_149] : memref<16x256xf32, #tpu.memory_space<vmem>>, vector<1x256xf32>
    %183 = vector.broadcast %182 : vector<1x256xf32> to vector<4x256xf32>
    %184 = arith.mulf %181, %183 : vector<4x256xf32>
    %c20_150 = arith.constant 20 : index
    %c0_151 = arith.constant 0 : index
    %185 = vector.load %arg21[%c20_150, %c0_151] : memref<36x256xf32, #tpu.memory_space<vmem>>, vector<4x256xf32>
    tpu.vector_store %arg21[%c20_150, %c0_151], %184 {strides = array<i32>} : memref<36x256xf32, #tpu.memory_space<vmem>>, vector<4x256xf32>,
    %c226_i32_152 = arith.constant 226 : i32
    %186 = tpu.dynamic_rotate %159 by %c226_i32_152 dim 1 : vector<4x256xf32>, i32 -> vector<4x256xf32>
    %c13_153 = arith.constant 13 : index
    %c0_154 = arith.constant 0 : index
    %187 = vector.load %arg2[%c13_153, %c0_154] : memref<16x256xf32, #tpu.memory_space<vmem>>, vector<1x256xf32>
    %188 = vector.broadcast %187 : vector<1x256xf32> to vector<4x256xf32>
    %189 = arith.mulf %186, %188 : vector<4x256xf32>
    %c24_155 = arith.constant 24 : index
    %c0_156 = arith.constant 0 : index
    %190 = vector.load %arg21[%c24_155, %c0_156] : memref<36x256xf32, #tpu.memory_space<vmem>>, vector<4x256xf32>
    tpu.vector_store %arg21[%c24_155, %c0_156], %189 {strides = array<i32>} : memref<36x256xf32, #tpu.memory_space<vmem>>, vector<4x256xf32>,
    %c224_i32_157 = arith.constant 224 : i32
    %191 = tpu.dynamic_rotate %159 by %c224_i32_157 dim 1 : vector<4x256xf32>, i32 -> vector<4x256xf32>
    %c14_158 = arith.constant 14 : index
    %c0_159 = arith.constant 0 : index
    %192 = vector.load %arg2[%c14_158, %c0_159] : memref<16x256xf32, #tpu.memory_space<vmem>>, vector<1x256xf32>
    %193 = vector.broadcast %192 : vector<1x256xf32> to vector<4x256xf32>
    %194 = arith.mulf %191, %193 : vector<4x256xf32>
    %c28_160 = arith.constant 28 : index
    %c0_161 = arith.constant 0 : index
    %195 = vector.load %arg21[%c28_160, %c0_161] : memref<36x256xf32, #tpu.memory_space<vmem>>, vector<4x256xf32>
    tpu.vector_store %arg21[%c28_160, %c0_161], %194 {strides = array<i32>} : memref<36x256xf32, #tpu.memory_space<vmem>>, vector<4x256xf32>,
    %c222_i32_162 = arith.constant 222 : i32
    %196 = tpu.dynamic_rotate %159 by %c222_i32_162 dim 1 : vector<4x256xf32>, i32 -> vector<4x256xf32>
    %c15_163 = arith.constant 15 : index
    %c0_164 = arith.constant 0 : index
    %197 = vector.load %arg2[%c15_163, %c0_164] : memref<16x256xf32, #tpu.memory_space<vmem>>, vector<1x256xf32>
    %198 = vector.broadcast %197 : vector<1x256xf32> to vector<4x256xf32>
    %199 = arith.mulf %196, %198 : vector<4x256xf32>
    %c32_165 = arith.constant 32 : index
    %c0_166 = arith.constant 0 : index
    %200 = vector.load %arg21[%c32_165, %c0_166] : memref<36x256xf32, #tpu.memory_space<vmem>>, vector<4x256xf32>
    tpu.vector_store %arg21[%c32_165, %c0_166], %199 {strides = array<i32>} : memref<36x256xf32, #tpu.memory_space<vmem>>, vector<4x256xf32>,
    %c0_167 = arith.constant 0 : index
    %c0_168 = arith.constant 0 : index
    %201 = vector.load %arg11[%c0_167, %c0_168] : memref<4x36xf32, #tpu.memory_space<vmem>>, vector<4x36xf32>
    %c0_169 = arith.constant 0 : index
    %c0_170 = arith.constant 0 : index
    %202 = vector.load %arg21[%c0_169, %c0_170] : memref<36x256xf32, #tpu.memory_space<vmem>>, vector<36x256xf32>
    %cst_171 = arith.constant dense<0.000000e+00> : vector<4x256xf32>
    %203 = tpu.matmul %201, %202, %cst_171 {dimension_numbers = #tpu.dot_dimension_numbers<[1], [0], [0], [1], [0, 0, 1, 1], [], []>} : vector<4x36xf32>, vector<36x256xf32>, vector<4x256xf32> -> vector<4x256xf32>
    %c0_172 = arith.constant 0 : index
    %c0_173 = arith.constant 0 : index
    %204 = vector.load %arg12[%c0_172, %c0_173] : memref<4x1xf32, #tpu.memory_space<vmem>>, vector<4x1xf32>
    %205 = vector.broadcast %204 : vector<4x1xf32> to vector<4x256xf32>
    %206 = arith.addf %203, %205 : vector<4x256xf32>
    %cst_174 = arith.constant 0.000000e+00 : f32
    %207 = vector.broadcast %cst_174 : f32 to vector<4x256xf32>
    %208 = arith.maximumf %206, %207 : vector<4x256xf32>
    %c0_175 = arith.constant 0 : index
    %c0_176 = arith.constant 0 : index
    %c0_177 = arith.constant 0 : index
    %209 = vector.load %arg13[%c0_175, %c0_176, %c0_177] : memref<2x4x4xf32, #tpu.memory_space<vmem>>, vector<1x4x4xf32>
    %210 = vector.shape_cast %209 : vector<1x4x4xf32> to vector<4x4xf32>
    %cst_178 = arith.constant dense<0.000000e+00> : vector<4x256xf32>
    %211 = tpu.matmul %210, %50, %cst_178 {dimension_numbers = #tpu.dot_dimension_numbers<[1], [0], [0], [1], [0, 0, 1, 1], [], []>} : vector<4x4xf32>, vector<4x256xf32>, vector<4x256xf32> -> vector<4x256xf32>
    %c1_179 = arith.constant 1 : index
    %c0_180 = arith.constant 0 : index
    %c0_181 = arith.constant 0 : index
    %212 = vector.load %arg13[%c1_179, %c0_180, %c0_181] : memref<2x4x4xf32, #tpu.memory_space<vmem>>, vector<1x4x4xf32>
    %213 = vector.shape_cast %212 : vector<1x4x4xf32> to vector<4x4xf32>
    %cst_182 = arith.constant dense<0.000000e+00> : vector<4x256xf32>
    %214 = tpu.matmul %213, %208, %cst_182 {dimension_numbers = #tpu.dot_dimension_numbers<[1], [0], [0], [1], [0, 0, 1, 1], [], []>} : vector<4x4xf32>, vector<4x256xf32>, vector<4x256xf32> -> vector<4x256xf32>
    %215 = arith.addf %211, %214 : vector<4x256xf32>
    %c0_183 = arith.constant 0 : index
    %c0_184 = arith.constant 0 : index
    %216 = vector.load %arg14[%c0_183, %c0_184] : memref<4x1xf32, #tpu.memory_space<vmem>>, vector<4x1xf32>
    %217 = vector.broadcast %216 : vector<4x1xf32> to vector<4x256xf32>
    %218 = arith.addf %215, %217 : vector<4x256xf32>
    %c17_i32_185 = arith.constant 17 : i32
    %219 = tpu.dynamic_rotate %218 by %c17_i32_185 dim 1 : vector<4x256xf32>, i32 -> vector<4x256xf32>
    %c0_186 = arith.constant 0 : index
    %c0_187 = arith.constant 0 : index
    %220 = vector.load %arg2[%c0_186, %c0_187] : memref<16x256xf32, #tpu.memory_space<vmem>>, vector<1x256xf32>
    %221 = vector.broadcast %220 : vector<1x256xf32> to vector<4x256xf32>
    %222 = arith.mulf %219, %221 : vector<4x256xf32>
    %c0_188 = arith.constant 0 : index
    %c0_189 = arith.constant 0 : index
    %223 = vector.load %arg21[%c0_188, %c0_189] : memref<36x256xf32, #tpu.memory_space<vmem>>, vector<4x256xf32>
    tpu.vector_store %arg21[%c0_188, %c0_189], %222 {strides = array<i32>} : memref<36x256xf32, #tpu.memory_space<vmem>>, vector<4x256xf32>,
    %c16_i32_190 = arith.constant 16 : i32
    %224 = tpu.dynamic_rotate %218 by %c16_i32_190 dim 1 : vector<4x256xf32>, i32 -> vector<4x256xf32>
    %c1_191 = arith.constant 1 : index
    %c0_192 = arith.constant 0 : index
    %225 = vector.load %arg2[%c1_191, %c0_192] : memref<16x256xf32, #tpu.memory_space<vmem>>, vector<1x256xf32>
    %226 = vector.broadcast %225 : vector<1x256xf32> to vector<4x256xf32>
    %227 = arith.mulf %224, %226 : vector<4x256xf32>
    %c4_193 = arith.constant 4 : index
    %c0_194 = arith.constant 0 : index
    %228 = vector.load %arg21[%c4_193, %c0_194] : memref<36x256xf32, #tpu.memory_space<vmem>>, vector<4x256xf32>
    tpu.vector_store %arg21[%c4_193, %c0_194], %227 {strides = array<i32>} : memref<36x256xf32, #tpu.memory_space<vmem>>, vector<4x256xf32>,
    %c15_i32_195 = arith.constant 15 : i32
    %229 = tpu.dynamic_rotate %218 by %c15_i32_195 dim 1 : vector<4x256xf32>, i32 -> vector<4x256xf32>
    %c2_196 = arith.constant 2 : index
    %c0_197 = arith.constant 0 : index
    %230 = vector.load %arg2[%c2_196, %c0_197] : memref<16x256xf32, #tpu.memory_space<vmem>>, vector<1x256xf32>
    %231 = vector.broadcast %230 : vector<1x256xf32> to vector<4x256xf32>
    %232 = arith.mulf %229, %231 : vector<4x256xf32>
    %c8_198 = arith.constant 8 : index
    %c0_199 = arith.constant 0 : index
    %233 = vector.load %arg21[%c8_198, %c0_199] : memref<36x256xf32, #tpu.memory_space<vmem>>, vector<4x256xf32>
    tpu.vector_store %arg21[%c8_198, %c0_199], %232 {strides = array<i32>} : memref<36x256xf32, #tpu.memory_space<vmem>>, vector<4x256xf32>,
    %c1_i32_200 = arith.constant 1 : i32
    %234 = tpu.dynamic_rotate %218 by %c1_i32_200 dim 1 : vector<4x256xf32>, i32 -> vector<4x256xf32>
    %c3_201 = arith.constant 3 : index
    %c0_202 = arith.constant 0 : index
    %235 = vector.load %arg2[%c3_201, %c0_202] : memref<16x256xf32, #tpu.memory_space<vmem>>, vector<1x256xf32>
    %236 = vector.broadcast %235 : vector<1x256xf32> to vector<4x256xf32>
    %237 = arith.mulf %234, %236 : vector<4x256xf32>
    %c12_203 = arith.constant 12 : index
    %c0_204 = arith.constant 0 : index
    %238 = vector.load %arg21[%c12_203, %c0_204] : memref<36x256xf32, #tpu.memory_space<vmem>>, vector<4x256xf32>
    tpu.vector_store %arg21[%c12_203, %c0_204], %237 {strides = array<i32>} : memref<36x256xf32, #tpu.memory_space<vmem>>, vector<4x256xf32>,
    %c16_205 = arith.constant 16 : index
    %c0_206 = arith.constant 0 : index
    %239 = vector.load %arg21[%c16_205, %c0_206] : memref<36x256xf32, #tpu.memory_space<vmem>>, vector<4x256xf32>
    tpu.vector_store %arg21[%c16_205, %c0_206], %218 {strides = array<i32>} : memref<36x256xf32, #tpu.memory_space<vmem>>, vector<4x256xf32>,
    %c255_i32_207 = arith.constant 255 : i32
    %240 = tpu.dynamic_rotate %218 by %c255_i32_207 dim 1 : vector<4x256xf32>, i32 -> vector<4x256xf32>
    %c4_208 = arith.constant 4 : index
    %c0_209 = arith.constant 0 : index
    %241 = vector.load %arg2[%c4_208, %c0_209] : memref<16x256xf32, #tpu.memory_space<vmem>>, vector<1x256xf32>
    %242 = vector.broadcast %241 : vector<1x256xf32> to vector<4x256xf32>
    %243 = arith.mulf %240, %242 : vector<4x256xf32>
    %c20_210 = arith.constant 20 : index
    %c0_211 = arith.constant 0 : index
    %244 = vector.load %arg21[%c20_210, %c0_211] : memref<36x256xf32, #tpu.memory_space<vmem>>, vector<4x256xf32>
    tpu.vector_store %arg21[%c20_210, %c0_211], %243 {strides = array<i32>} : memref<36x256xf32, #tpu.memory_space<vmem>>, vector<4x256xf32>,
    %c241_i32_212 = arith.constant 241 : i32
    %245 = tpu.dynamic_rotate %218 by %c241_i32_212 dim 1 : vector<4x256xf32>, i32 -> vector<4x256xf32>
    %c5_213 = arith.constant 5 : index
    %c0_214 = arith.constant 0 : index
    %246 = vector.load %arg2[%c5_213, %c0_214] : memref<16x256xf32, #tpu.memory_space<vmem>>, vector<1x256xf32>
    %247 = vector.broadcast %246 : vector<1x256xf32> to vector<4x256xf32>
    %248 = arith.mulf %245, %247 : vector<4x256xf32>
    %c24_215 = arith.constant 24 : index
    %c0_216 = arith.constant 0 : index
    %249 = vector.load %arg21[%c24_215, %c0_216] : memref<36x256xf32, #tpu.memory_space<vmem>>, vector<4x256xf32>
    tpu.vector_store %arg21[%c24_215, %c0_216], %248 {strides = array<i32>} : memref<36x256xf32, #tpu.memory_space<vmem>>, vector<4x256xf32>,
    %c240_i32_217 = arith.constant 240 : i32
    %250 = tpu.dynamic_rotate %218 by %c240_i32_217 dim 1 : vector<4x256xf32>, i32 -> vector<4x256xf32>
    %c6_218 = arith.constant 6 : index
    %c0_219 = arith.constant 0 : index
    %251 = vector.load %arg2[%c6_218, %c0_219] : memref<16x256xf32, #tpu.memory_space<vmem>>, vector<1x256xf32>
    %252 = vector.broadcast %251 : vector<1x256xf32> to vector<4x256xf32>
    %253 = arith.mulf %250, %252 : vector<4x256xf32>
    %c28_220 = arith.constant 28 : index
    %c0_221 = arith.constant 0 : index
    %254 = vector.load %arg21[%c28_220, %c0_221] : memref<36x256xf32, #tpu.memory_space<vmem>>, vector<4x256xf32>
    tpu.vector_store %arg21[%c28_220, %c0_221], %253 {strides = array<i32>} : memref<36x256xf32, #tpu.memory_space<vmem>>, vector<4x256xf32>,
    %c239_i32_222 = arith.constant 239 : i32
    %255 = tpu.dynamic_rotate %218 by %c239_i32_222 dim 1 : vector<4x256xf32>, i32 -> vector<4x256xf32>
    %c7_223 = arith.constant 7 : index
    %c0_224 = arith.constant 0 : index
    %256 = vector.load %arg2[%c7_223, %c0_224] : memref<16x256xf32, #tpu.memory_space<vmem>>, vector<1x256xf32>
    %257 = vector.broadcast %256 : vector<1x256xf32> to vector<4x256xf32>
    %258 = arith.mulf %255, %257 : vector<4x256xf32>
    %c32_225 = arith.constant 32 : index
    %c0_226 = arith.constant 0 : index
    %259 = vector.load %arg21[%c32_225, %c0_226] : memref<36x256xf32, #tpu.memory_space<vmem>>, vector<4x256xf32>
    tpu.vector_store %arg21[%c32_225, %c0_226], %258 {strides = array<i32>} : memref<36x256xf32, #tpu.memory_space<vmem>>, vector<4x256xf32>,
    %c0_227 = arith.constant 0 : index
    %c0_228 = arith.constant 0 : index
    %260 = vector.load %arg15[%c0_227, %c0_228] : memref<4x36xf32, #tpu.memory_space<vmem>>, vector<4x36xf32>
    %c0_229 = arith.constant 0 : index
    %c0_230 = arith.constant 0 : index
    %261 = vector.load %arg21[%c0_229, %c0_230] : memref<36x256xf32, #tpu.memory_space<vmem>>, vector<36x256xf32>
    %cst_231 = arith.constant dense<0.000000e+00> : vector<4x256xf32>
    %262 = tpu.matmul %260, %261, %cst_231 {dimension_numbers = #tpu.dot_dimension_numbers<[1], [0], [0], [1], [0, 0, 1, 1], [], []>} : vector<4x36xf32>, vector<36x256xf32>, vector<4x256xf32> -> vector<4x256xf32>
    %c0_232 = arith.constant 0 : index
    %c0_233 = arith.constant 0 : index
    %263 = vector.load %arg16[%c0_232, %c0_233] : memref<4x1xf32, #tpu.memory_space<vmem>>, vector<4x1xf32>
    %264 = vector.broadcast %263 : vector<4x1xf32> to vector<4x256xf32>
    %265 = arith.addf %262, %264 : vector<4x256xf32>
    %cst_234 = arith.constant 0.000000e+00 : f32
    %266 = vector.broadcast %cst_234 : f32 to vector<4x256xf32>
    %267 = arith.maximumf %265, %266 : vector<4x256xf32>
    %c0_235 = arith.constant 0 : index
    %c0_236 = arith.constant 0 : index
    %c0_237 = arith.constant 0 : index
    %268 = vector.load %arg17[%c0_235, %c0_236, %c0_237] : memref<3x4x4xf32, #tpu.memory_space<vmem>>, vector<1x4x4xf32>
    %269 = vector.shape_cast %268 : vector<1x4x4xf32> to vector<4x4xf32>
    %cst_238 = arith.constant dense<0.000000e+00> : vector<4x256xf32>
    %270 = tpu.matmul %269, %99, %cst_238 {dimension_numbers = #tpu.dot_dimension_numbers<[1], [0], [0], [1], [0, 0, 1, 1], [], []>} : vector<4x4xf32>, vector<4x256xf32>, vector<4x256xf32> -> vector<4x256xf32>
    %c1_239 = arith.constant 1 : index
    %c0_240 = arith.constant 0 : index
    %c0_241 = arith.constant 0 : index
    %271 = vector.load %arg17[%c1_239, %c0_240, %c0_241] : memref<3x4x4xf32, #tpu.memory_space<vmem>>, vector<1x4x4xf32>
    %272 = vector.shape_cast %271 : vector<1x4x4xf32> to vector<4x4xf32>
    %cst_242 = arith.constant dense<0.000000e+00> : vector<4x256xf32>
    %273 = tpu.matmul %272, %149, %cst_242 {dimension_numbers = #tpu.dot_dimension_numbers<[1], [0], [0], [1], [0, 0, 1, 1], [], []>} : vector<4x4xf32>, vector<4x256xf32>, vector<4x256xf32> -> vector<4x256xf32>
    %274 = arith.addf %270, %273 : vector<4x256xf32>
    %c2_243 = arith.constant 2 : index
    %c0_244 = arith.constant 0 : index
    %c0_245 = arith.constant 0 : index
    %275 = vector.load %arg17[%c2_243, %c0_244, %c0_245] : memref<3x4x4xf32, #tpu.memory_space<vmem>>, vector<1x4x4xf32>
    %276 = vector.shape_cast %275 : vector<1x4x4xf32> to vector<4x4xf32>
    %cst_246 = arith.constant dense<0.000000e+00> : vector<4x256xf32>
    %277 = tpu.matmul %276, %267, %cst_246 {dimension_numbers = #tpu.dot_dimension_numbers<[1], [0], [0], [1], [0, 0, 1, 1], [], []>} : vector<4x4xf32>, vector<4x256xf32>, vector<4x256xf32> -> vector<4x256xf32>
    %278 = arith.addf %274, %277 : vector<4x256xf32>
    %c0_247 = arith.constant 0 : index
    %c0_248 = arith.constant 0 : index
    %279 = vector.load %arg18[%c0_247, %c0_248] : memref<4x1xf32, #tpu.memory_space<vmem>>, vector<4x1xf32>
    %280 = vector.broadcast %279 : vector<4x1xf32> to vector<4x256xf32>
    %281 = arith.addf %278, %280 : vector<4x256xf32>
    %c0_249 = arith.constant 0 : index
    %c0_250 = arith.constant 0 : index
    %282 = vector.load %arg19[%c0_249, %c0_250] : memref<4x4xf32, #tpu.memory_space<vmem>>, vector<4x4xf32>
    %cst_251 = arith.constant dense<0.000000e+00> : vector<4x256xf32>
    %283 = tpu.matmul %282, %281, %cst_251 {dimension_numbers = #tpu.dot_dimension_numbers<[1], [0], [0], [1], [0, 0, 1, 1], [], []>} : vector<4x4xf32>, vector<4x256xf32>, vector<4x256xf32> -> vector<4x256xf32>
    %cst_252 = arith.constant dense<0.000000e+00> : vector<4xf32>
    %284 = vector.multi_reduction <add>, %283, %cst_252 [1] : vector<4x256xf32> to vector<4xf32>
    %285 = vector.shape_cast %284 : vector<4xf32> to vector<4x1xf32>
    %cst_253 = arith.constant 2.560000e+02 : f32
    %286 = vector.broadcast %cst_253 : f32 to vector<4x1xf32>
    %287 = arith.divf %285, %286 : vector<4x1xf32>
    %288 = arith.negf %287 : vector<4x1xf32>
    %289 = math.exp %288 : vector<4x1xf32>
    %cst_254 = arith.constant 1.000000e+00 : f32
    %290 = vector.broadcast %cst_254 : f32 to vector<4x1xf32>
    %291 = arith.addf %290, %289 : vector<4x1xf32>
    %292 = arith.divf %290, %291 : vector<4x1xf32>
    %293 = vector.broadcast %292 : vector<4x1xf32> to vector<4x256xf32>
    %294 = arith.mulf %281, %293 : vector<4x256xf32>
    %295 = arith.addf %294, %1 : vector<4x256xf32>
    %c0_255 = arith.constant 0 : index
    %c0_256 = arith.constant 0 : index
    %c0_257 = arith.constant 0 : index
    %296 = vector.load %arg20[%c0_255, %c0_256, %c0_257] : memref<1x4x256xf32, #tpu.memory_space<vmem>>, vector<1x4x256xf32>
    %297 = vector.shape_cast %296 : vector<1x4x256xf32> to vector<4x256xf32>
    %298 = vector.shape_cast %295 : vector<4x256xf32> to vector<1x4x256xf32>
    tpu.vector_store %arg20[%c0_255, %c0_256, %c0_257], %298 {strides = array<i32>} : memref<1x4x256xf32, #tpu.memory_space<vmem>>, vector<1x4x256xf32>,
    return
  }
  func.func @transform_0(%arg0: i32) -> (i32, i32, i32) {
    %c0_i32 = arith.constant 0 : i32
    %c0_i32_0 = arith.constant 0 : i32
    %c0_i32_1 = arith.constant 0 : i32
    return %arg0, %c0_i32, %c0_i32_0 : i32, i32, i32
  }
  func.func @transform_1(%arg0: i32) -> (i32, i32) {
    %c0_i32 = arith.constant 0 : i32
    %c0_i32_0 = arith.constant 0 : i32
    %c0_i32_1 = arith.constant 0 : i32
    return %c0_i32, %c0_i32_0 : i32, i32
  }
  func.func @transform_2(%arg0: i32) -> (i32, i32) {
    %c0_i32 = arith.constant 0 : i32
    %c0_i32_0 = arith.constant 0 : i32
    %c0_i32_1 = arith.constant 0 : i32
    return %c0_i32, %c0_i32_0 : i32, i32
  }
  func.func @transform_3(%arg0: i32) -> (i32, i32) {
    %c0_i32 = arith.constant 0 : i32
    %c0_i32_0 = arith.constant 0 : i32
    %c0_i32_1 = arith.constant 0 : i32
    return %c0_i32, %c0_i32_0 : i32, i32
  }
  func.func @transform_4(%arg0: i32) -> (i32, i32) {
    %c0_i32 = arith.constant 0 : i32
    %c0_i32_0 = arith.constant 0 : i32
    %c0_i32_1 = arith.constant 0 : i32
    return %c0_i32, %c0_i32_0 : i32, i32
  }
  func.func @transform_5(%arg0: i32) -> (i32, i32) {
    %c0_i32 = arith.constant 0 : i32
    %c0_i32_0 = arith.constant 0 : i32
    %c0_i32_1 = arith.constant 0 : i32
    return %c0_i32, %c0_i32_0 : i32, i32
  }
  func.func @transform_6(%arg0: i32) -> (i32, i32) {
    %c0_i32 = arith.constant 0 : i32
    %c0_i32_0 = arith.constant 0 : i32
    %c0_i32_1 = arith.constant 0 : i32
    return %c0_i32, %c0_i32_0 : i32, i32
  }
  func.func @transform_7(%arg0: i32) -> (i32, i32) {
    %c0_i32 = arith.constant 0 : i32
    %c0_i32_0 = arith.constant 0 : i32
    %c0_i32_1 = arith.constant 0 : i32
    return %c0_i32, %c0_i32_0 : i32, i32
  }
  func.func @transform_8(%arg0: i32) -> (i32, i32, i32) {
    %c0_i32 = arith.constant 0 : i32
    %c0_i32_0 = arith.constant 0 : i32
    %c0_i32_1 = arith.constant 0 : i32
    %c0_i32_2 = arith.constant 0 : i32
    return %c0_i32, %c0_i32_0, %c0_i32_1 : i32, i32, i32
  }
  func.func @transform_9(%arg0: i32) -> (i32, i32) {
    %c0_i32 = arith.constant 0 : i32
    %c0_i32_0 = arith.constant 0 : i32
    %c0_i32_1 = arith.constant 0 : i32
    return %c0_i32, %c0_i32_0 : i32, i32
  }
  func.func @transform_10(%arg0: i32) -> (i32, i32) {
    %c0_i32 = arith.constant 0 : i32
    %c0_i32_0 = arith.constant 0 : i32
    %c0_i32_1 = arith.constant 0 : i32
    return %c0_i32, %c0_i32_0 : i32, i32
  }
  func.func @transform_11(%arg0: i32) -> (i32, i32) {
    %c0_i32 = arith.constant 0 : i32
    %c0_i32_0 = arith.constant 0 : i32
    %c0_i32_1 = arith.constant 0 : i32
    return %c0_i32, %c0_i32_0 : i32, i32
  }
  func.func @transform_12(%arg0: i32) -> (i32, i32, i32) {
    %c0_i32 = arith.constant 0 : i32
    %c0_i32_0 = arith.constant 0 : i32
    %c0_i32_1 = arith.constant 0 : i32
    %c0_i32_2 = arith.constant 0 : i32
    return %c0_i32, %c0_i32_0, %c0_i32_1 : i32, i32, i32
  }
  func.func @transform_13(%arg0: i32) -> (i32, i32) {
    %c0_i32 = arith.constant 0 : i32
    %c0_i32_0 = arith.constant 0 : i32
    %c0_i32_1 = arith.constant 0 : i32
    return %c0_i32, %c0_i32_0 : i32, i32
  }
  func.func @transform_14(%arg0: i32) -> (i32, i32) {
    %c0_i32 = arith.constant 0 : i32
    %c0_i32_0 = arith.constant 0 : i32
    %c0_i32_1 = arith.constant 0 : i32
    return %c0_i32, %c0_i32_0 : i32, i32
  }
  func.func @transform_15(%arg0: i32) -> (i32, i32) {
    %c0_i32 = arith.constant 0 : i32
    %c0_i32_0 = arith.constant 0 : i32
    %c0_i32_1 = arith.constant 0 : i32
    return %c0_i32, %c0_i32_0 : i32, i32
  }
  func.func @transform_16(%arg0: i32) -> (i32, i32, i32) {
    %c0_i32 = arith.constant 0 : i32
    %c0_i32_0 = arith.constant 0 : i32
    %c0_i32_1 = arith.constant 0 : i32
    %c0_i32_2 = arith.constant 0 : i32
    return %c0_i32, %c0_i32_0, %c0_i32_1 : i32, i32, i32
  }
  func.func @transform_17(%arg0: i32) -> (i32, i32) {
    %c0_i32 = arith.constant 0 : i32
    %c0_i32_0 = arith.constant 0 : i32
    %c0_i32_1 = arith.constant 0 : i32
    return %c0_i32, %c0_i32_0 : i32, i32
  }
  func.func @transform_18(%arg0: i32) -> (i32, i32) {
    %c0_i32 = arith.constant 0 : i32
    %c0_i32_0 = arith.constant 0 : i32
    %c0_i32_1 = arith.constant 0 : i32
    return %c0_i32, %c0_i32_0 : i32, i32
  }
  func.func @transform_19(%arg0: i32) -> (i32, i32, i32) {
    %c0_i32 = arith.constant 0 : i32
    %c0_i32_0 = arith.constant 0 : i32
    %c0_i32_1 = arith.constant 0 : i32
    return %arg0, %c0_i32, %c0_i32_0 : i32, i32, i32
  }
}

</mosaic_0001>

<bundles_post_ra>
// kernel: ehffb_forward.1
= control target key start
LH: loop header
LB: loop body
LE: loop exit
PB: predicated region body
PF: predicated region fallthrough
CT: control target
= control target key end

     0   :  { %s3873_s0 = inlined_call_operand.vmem [shape: f32[2,4,256], index: 0, kind: input, shape index: {}]   ;;  %s3874_s1 = inlined_call_operand.vmem [shape: f32[16,256], index: 1, kind: input, shape index: {}]   ;;  %s3875_s2 = inlined_call_operand.vmem [shape: f32[4,36], index: 2, kind: input, shape index: {}]   ;;  %s3876_s3 = inlined_call_operand.vmem [shape: f32[4,1], index: 3, kind: input, shape index: {}]   ;;  %s3877_s4 = inlined_call_operand.vmem [shape: f32[4,36], index: 4, kind: input, shape index: {}]   ;;  %s3878_s5 = inlined_call_operand.vmem [shape: f32[4,1], index: 5, kind: input, shape index: {}]   ;;  %s3879_s6 = inlined_call_operand.vmem [shape: f32[4,36], index: 6, kind: input, shape index: {}]   ;;  %s3880_s7 = inlined_call_operand.vmem [shape: f32[4,1], index: 7, kind: input, shape index: {}]   ;;  %s3881_s8 = inlined_call_operand.vmem [shape: f32[2,4,4], index: 8, kind: input, shape index: {}]   ;;  %s3882_s9 = inlined_call_operand.vmem [shape: f32[4,1], index: 9, kind: input, shape index: {}]   ;;  %s3883_s10 = inlined_call_operand.vmem [shape: f32[4,36], index: 10, kind: input, shape index: {}]   ;;  %s3884_s11 = inlined_call_operand.vmem [shape: f32[4,1], index: 11, kind: input, shape index: {}]   ;;  %s3885_s12 = inlined_call_operand.vmem [shape: f32[2,4,4], index: 12, kind: input, shape index: {}]   ;;  %s3886_s13 = inlined_call_operand.vmem [shape: f32[4,1], index: 13, kind: input, shape index: {}]   ;;  %s3887_s14 = inlined_call_operand.vmem [shape: f32[4,36], index: 14, kind: input, shape index: {}]   ;;  %s3888_s15 = inlined_call_operand.vmem [shape: f32[4,1], index: 15, kind: input, shape index: {}]   ;;  %s3889_s16 = inlined_call_operand.vmem [shape: f32[3,4,4], index: 16, kind: input, shape index: {}]   ;;  %s3890_s17 = inlined_call_operand.vmem [shape: f32[4,1], index: 17, kind: input, shape index: {}]   ;;  %s3891_s18 = inlined_call_operand.vmem [shape: f32[4,4], index: 18, kind: input, shape index: {}]   ;;  %s3892_s19 = inlined_call_operand.vmem [shape: f32[2,4,256], index: 19, kind: output, shape index: {}]  }
   0x1   :  { %3922 = sst [smem:[#allocation3_spill]] %s3873_s0  ;;  %s3194_s0 = smov 0  }
   0x2   :  { %3923 = sst [smem:[#allocation4_spill]] %s3874_s1 }
   0x3   :  { %3924 = sst [smem:[#allocation5_spill]] %s3875_s2 }
   0x4   :  { %3925 = sst [smem:[#allocation6_spill]] %s3876_s3 }
   0x5 LB: > { %s2893_s30 = sadd.s32 4294967295, %s3074_s0   ;;  %p2897_p0 = scmp.ge.s32.totalorder %s3074_s0, 1  ;;  %s3074_s0 = sphi %s3194_s0, %s29_s0  }
   0x6   : > { %p537_p1 = scmp.lt.s32.totalorder %s3074_s0, 3 }
   0x8   : > { %p538_p2 = pnand %p2897_p0, %p537_p1 }
   0x9   : > { %p593_p3 = scmp.lt.s32.totalorder (!%p538_p2), %s2893_s30, 1  ;;  %s3926_s22 = sld [smem:[#allocation3_spill]] (!%p538_p2)  ;;  %v3084_v2 = vmov (!%p538_p2), 0.0   ;;  %v3085_v4 = vmov (!%p538_p2), 0   ;;  %v611_v5 = vlaneseq (!%p538_p2)  ;;  %vm848_vm8 = vcmask (!%p538_p2), 1043456  }
   0xa   : > { %541 = sbr.rel (%p538_p2) target bundleno = 2963 (0xb93), region = 96  ;;  %s3907_s23 = smov (!%p538_p2), 2   ;;  %919 = vmatprep.mubr.f32.mxu0 (!%p538_p2), %v3084_v2  ;;  %1235 = vmatprep.mubr.f32.mxu1 (!%p538_p2), %v3084_v2  ;;  %vm844_vm9 = vcmask (!%p538_p2), 293888  }
   0xb   : > { %s3909_s24 = smov (!%p538_p2), 32   ;;  %s3905_s25 = smov (!%p538_p2), 34   ;;  %3061 = vset.pattern.permute.xlu0 (!%p538_p2), %v3085_v4  ;;  %3062 = vset.pattern.permute.xlu1 (!%p538_p2), %v3085_v4  ;;  %v620_v6 = vshrl.u32 (!%p538_p2), %v611_v5, 7  ;;  %v3255_v7 = vand.u32 (!%p538_p2), 127, %v611_v5 }
   0xc   : > { %s3903_s3 = smov (!%p538_p2), 30   ;;  %s3901_s26 = smov (!%p538_p2), 126  }
   0xd   : > { %s3899_s27 = smov (!%p538_p2), 96   ;;  %s3897_s28 = smov (!%p538_p2), 98   ;;  %v3257_v8 = vsub.s32 (!%p538_p2), 0, %v620_v6  ;;  %v3259_v9 = vsub.s32 (!%p538_p2), 1, %v620_v6  ;;  %vm691_vm0 = vcmp.lt.s32.totalorder (!%p538_p2), %v3255_v7, 2  ;;  %vm613_vm1 = vcmp.lt.s32.totalorder (!%p538_p2), %v3255_v7, 34 }
   0xe   : > { %s3895_s29 = smov (!%p538_p2), 94   ;;  %vm637_vm2 = vcmp.lt.s32.totalorder (!%p538_p2), %v3255_v7, 32  ;;  %vm667_vm3 = vcmp.lt.s32.totalorder (!%p538_p2), %v3255_v7, 30  ;;  %vm723_vm4 = vcmp.lt.s32.totalorder (!%p538_p2), %v3255_v7, 126  ;;  %vm777_vm5 = vcmp.lt.s32.totalorder (!%p538_p2), %v3255_v7, 96  ;;  %s3088_s21 = smov (!%p538_p2), 17  }
   0xf   : > { %vm3912_vm6 = vcmp.lt.s32.totalorder (!%p538_p2), %v3255_v7, 98  ;;  %vm3911_vm7 = vcmp.lt.s32.totalorder (!%p538_p2), %v3255_v7, 94  ;;  %s3089_s1 = smov (!%p538_p2), 15   ;;  %vm955_vm10 = vcmp.lt.s32.totalorder (!%p538_p2), %v3255_v7, 16  ;;  %vm1009_vm11 = vcmp.lt.s32.totalorder (!%p538_p2), %v3255_v7, 1 }
  0x10   : > { %vm932_vm12 = vcmp.lt.s32.totalorder (!%p538_p2), %v3255_v7, 17  ;;  %vm985_vm13 = vcmp.lt.s32.totalorder (!%p538_p2), %v3255_v7, 15  ;;  %vm1041_vm14 = vcmp.lt.s32.totalorder (!%p538_p2), %v3255_v7, 127  ;;  %vm1095_vm15 = vcmp.lt.s32.totalorder (!%p538_p2), %v3255_v7, 112 }
  0x11   : > { %s3950_s30 = smov (!%p593_p3, %s2893_s30), 1 }
  0x12   : > { %s3894_s20 = sshll.u32 %s3950_s30, 3 }
  0x13   : > { %s597_s2 = scalar_lea.vmem %s3926_s22, %s3894_s20  ;;  %s3927_s22 = sld [smem:[#allocation6_spill]] }
  0x14   : > { %v3210_v0 = vld [vmem:[%s597_s2] sm:$0xff]  ;;  %s3929_s20 = sld [smem:[#allocation5_spill]]  ;;  %s3086_s2 = smov 1  }
  0x15   : > { %687 = vrot.lane.b32.xlu1 %v3210_v0, %s3907_s23  ;;  %717 = vst [vmem:[#allocation2 + $0x20] sm:$0xf] %v3210_v0  ;;  %633 = vrot.lane.b32.xlu0 %v3210_v0, %s3909_s24  ;;  %v3219_v1 = vcombine.high %v3210_v0, %v3210_v0 }
  0x17   : > { %718 = vst [vmem:[#allocation2 + $0x28] sm:$0xf] %v3219_v1 }
  0x19   : > { %607 = vrot.lane.b32.xlu0 %v3210_v0, %s3905_s25  ;;  %689 = vrot.lane.b32.xlu1 %v3219_v1, %s3907_s23  ;;  %v838_v3 = vld [vmem:[%s3927_s22] sm:$0xf]  ;;  %s3913_s22 = smov 127   ;;  %s3934_s23 = smov 126  }
  0x1d   : > { %609 = vrot.lane.b32.xlu1 %v3219_v1, %s3905_s25  ;;  %635 = vrot.lane.b32.xlu0 %v3219_v1, %s3909_s24  ;;  %s3932_s25 = smov 34   ;;  %s3935_s24 = smov 96  }
  0x21   : > { %665 = vrot.lane.b32.xlu1 %v3219_v1, %s3903_s3  ;;  %663 = vrot.lane.b32.xlu0 %v3210_v0, %s3903_s3  ;;  %s3933_s3 = smov 30  }
  0x25   : > { %721 = vrot.lane.b32.xlu1 %v3219_v1, %s3901_s26  ;;  %719 = vrot.lane.b32.xlu0 %v3210_v0, %s3901_s26  ;;  %s3917_s26 = smov 111  }
  0x29   : > { %775 = vrot.lane.b32.xlu1 %v3219_v1, %s3899_s27  ;;  %773 = vrot.lane.b32.xlu0 %v3210_v0, %s3899_s27  ;;  %s3919_s27 = smov 113  }
  0x2d   : > { %751 = vrot.lane.b32.xlu1 %v3219_v1, %s3897_s28  ;;  %749 = vrot.lane.b32.xlu0 %v3210_v0, %s3897_s28  ;;  %s3087_s28 = smov 16  }
  0x31   : > { %805 = vrot.lane.b32.xlu1 %v3219_v1, %s3895_s29  ;;  %803 = vrot.lane.b32.xlu0 %v3210_v0, %s3895_s29  ;;  %s3928_s29 = sld [smem:[#allocation4_spill]] }
  0x35   : > { %841 = vperm.xlu0 %3061, %v838_v3  }
  0x37   : > { %v2905_v10 = vld [vmem:[%s3928_s29 + $0x13] ss:$8 sm:$0x3]  ;;  %v2902_v15 = vld [vmem:[%s3928_s29 + $0x10] ss:$8 sm:$0x3] }
  0x38   : > { %v700_v13 = vrot.slane %v2905_v10, %v3257_v8  ;;  %v704_v14 = vrot.slane %v2905_v10, %v3259_v9  ;;  %v2903_v16 = vld [vmem:[%s3928_s29 + $0x11] ss:$8 sm:$0x3]  ;;  %v622_v21 = vrot.slane %v2902_v15, %v3257_v8  ;;  %v626_v22 = vrot.slane %v2902_v15, %v3259_v9  ;;  %v2904_v23 = vld [vmem:[%s3928_s29 + $0x12] ss:$8 sm:$0x3] }
  0x39   : > { %v646_v26 = vrot.slane %v2903_v16, %v3257_v8  ;;  %v650_v27 = vrot.slane %v2903_v16, %v3259_v9  ;;  %v676_v32 = vrot.slane %v2904_v23, %v3257_v8  ;;  %v680_v33 = vrot.slane %v2904_v23, %v3259_v9  ;;  %v2906_v42 = vld [vmem:[%s3928_s29 + $0x14] ss:$8 sm:$0x3]  ;;  %v2908_v53 = vld [vmem:[%s3928_s29 + $0x16] ss:$8 sm:$0x3] }
  0x3a   : > { %v732_v51 = vrot.slane %v2906_v42, %v3257_v8  ;;  %v736_v52 = vrot.slane %v2906_v42, %v3259_v9  ;;  %v786_v60 = vrot.slane %v2908_v53, %v3257_v8  ;;  %v790_v61 = vrot.slane %v2908_v53, %v3259_v9  ;;  %v2907_v62 = vld [vmem:[%s3928_s29 + $0x15] ss:$8 sm:$0x3]  ;;  %v2909_v16 = vld [vmem:[%s3928_s29 + $0x17] ss:$8 sm:$0x3] }
  0x87   : > { %v688_v11 = vpop.permute.xlu1 %687  ;;  %v634_v12 = vpop.permute.xlu0 %633 }
  0x8b   : > { %v608_v17 = vpop.permute.xlu0 %607  ;;  %v690_v18 = vpop.permute.xlu1 %689 }
  0x8c   : > { %v692_v19 = vsel %vm691_vm0, %v688_v11, %v690_v18  ;;  %v693_v20 = vsel %vm691_vm0, %v690_v18, %v688_v11 }
  0x8d   : > { %v707_v24 = vmul.f32 %v700_v13, %v693_v20  ;;  %v708_v25 = vmul.f32 %v704_v14, %v692_v19  ;;  %v762_v13 = vrot.slane %v2907_v62, %v3257_v8  ;;  %v766_v14 = vrot.slane %v2907_v62, %v3259_v9 }
  0x8f   : > { %v711_v28 = vrot.slane %v707_v24, 4  ;;  %v712_v29 = vrot.slane %v708_v25, 4  ;;  %v610_v30 = vpop.permute.xlu1 %609  ;;  %v636_v31 = vpop.permute.xlu0 %635 }
  0x90   : > { %v614_v34 = vsel %vm613_vm1, %v608_v17, %v610_v30  ;;  %v615_v35 = vsel %vm613_vm1, %v610_v30, %v608_v17  ;;  %v638_v36 = vsel %vm637_vm2, %v634_v12, %v636_v31  ;;  %v639_v37 = vsel %vm637_vm2, %v636_v31, %v634_v12 }
  0x91   : > { %715 = vst [vmem:[#allocation2 + $0x10] sm:$0xf0] %v711_v28  ;;  %716 = vst [vmem:[#allocation2 + $0x18] sm:$0xf0] %v712_v29  ;;  %v629_v38 = vmul.f32 %v622_v21, %v615_v35  ;;  %v630_v39 = vmul.f32 %v626_v22, %v614_v34  ;;  %v653_v40 = vmul.f32 %v646_v26, %v639_v37 }
  0x92   : > { %v654_v41 = vmul.f32 %v650_v27, %v638_v36  ;;  %v816_v30 = vrot.slane %v2909_v16, %v3257_v8  ;;  %v820_v31 = vrot.slane %v2909_v16, %v3259_v9 }
  0x93   : > { %631 = vst [vmem:[#allocation2] sm:$0xf] %v629_v38  ;;  %632 = vst [vmem:[#allocation2 + $0x8] sm:$0xf] %v630_v39  ;;  %v657_v43 = vrot.slane %v653_v40, 4  ;;  %v666_v45 = vpop.permute.xlu1 %665  ;;  %v664_v46 = vpop.permute.xlu0 %663 }
  0x94   : > { %v658_v44 = vrot.slane %v654_v41, 4  ;;  %v668_v47 = vsel %vm667_vm3, %v664_v46, %v666_v45  ;;  %v669_v48 = vsel %vm667_vm3, %v666_v45, %v664_v46  ;;  %v827_v46 = vld [vmem:[%s3929_s20] sm:$0xf]  ;;  %s3915_s20 = smov 112  }
  0x95   : > { %661 = vst [vmem:[#allocation2] sm:$0xf0] %v657_v43  ;;  %v683_v49 = vmul.f32 %v676_v32, %v669_v48  ;;  %v684_v50 = vmul.f32 %v680_v33, %v668_v47 }
  0x96   : > { %662 = vst [vmem:[#allocation2 + $0x8] sm:$0xf0] %v658_v44 }
  0x97   : > { %685 = vst [vmem:[#allocation2 + $0x10] sm:$0xf] %v683_v49  ;;  %686 = vst [vmem:[#allocation2 + $0x18] sm:$0xf] %v684_v50  ;;  %v722_v54 = vpop.permute.xlu1 %721  ;;  %v720_v55 = vpop.permute.xlu0 %719 }
  0x98   : > { %v724_v56 = vsel %vm723_vm4, %v720_v55, %v722_v54  ;;  %v725_v57 = vsel %vm723_vm4, %v722_v54, %v720_v55  ;;  %v1156_v54 = vld [vmem:[%s3878_s5] sm:$0xf] }
  0x99   : > { %v739_v58 = vmul.f32 %v732_v51, %v724_v56  ;;  %v740_v59 = vmul.f32 %v736_v52, %v725_v57  ;;  %v2913_v55 = vld [vmem:[%s3928_s29 + $0x1] ss:$8 sm:$0x3] }
  0x9b   : > { %v743_v63 = vrot.slane %v739_v58, 4  ;;  %v744_v3 = vrot.slane %v740_v59, 4  ;;  %v776_v4 = vpop.permute.xlu1 %775  ;;  %v774_v5 = vpop.permute.xlu0 %773  ;;  %v964_v58 = vrot.slane %v2913_v55, %v3257_v8  ;;  %v968_v59 = vrot.slane %v2913_v55, %v3259_v9 }
  0x9c   : > { %v778_v6 = vsel %vm777_vm5, %v774_v5, %v776_v4  ;;  %v779_v10 = vsel %vm777_vm5, %v776_v4, %v774_v5  ;;  %v828_v18 = vld [vmem:[#allocation2] sm:$0xff] }
  0x9d   : > { %747 = vst [vmem:[#allocation2 + $0x20] sm:$0xf0] %v743_v63  ;;  %748 = vst [vmem:[#allocation2 + $0x28] sm:$0xf0] %v744_v3  ;;  %v793_v11 = vmul.f32 %v786_v60, %v778_v6  ;;  %v794_v12 = vmul.f32 %v790_v61, %v779_v10  ;;  %v829_v15 = vld [vmem:[#allocation2 + $0x8] sm:$0xff] }
  0x9e   : > { %v831_v17 = vld [vmem:[#allocation2 + $0x18] sm:$0xff]  ;;  %v830_v19 = vld [vmem:[#allocation2 + $0x10] sm:$0xff]  ;;  %v2915_v60 = vld [vmem:[%s3928_s29 + $0x3] ss:$8 sm:$0x3] }
  0x9f   : > { %v797_v20 = vrot.slane %v793_v11, 4  ;;  %v798_v21 = vrot.slane %v794_v12, 4  ;;  %v752_v22 = vpop.permute.xlu1 %751  ;;  %v750_v23 = vpop.permute.xlu0 %749  ;;  %v2987_v24 = vpack.c.bf16 %v831_v17, %v829_v15  ;;  %v2989_v25 = vpack.c.bf16 %v830_v19, %v828_v18  ;;  %v935_v11 = vld [vmem:[%s3928_s29] ss:$8 sm:$0x3] }
  0xa0   : > { %v754_v26 = vsel %vm3912_vm6, %v750_v23, %v752_v22  ;;  %v755_v27 = vsel %vm3912_vm6, %v752_v22, %v750_v23  ;;  %v1018_v6 = vrot.slane %v2915_v60, %v3257_v8  ;;  %v1022_v10 = vrot.slane %v2915_v60, %v3259_v9  ;;  %v2914_v22 = vld [vmem:[%s3928_s29 + $0x2] ss:$8 sm:$0x3] }
  0xa1   : > { %801 = vst [vmem:[#allocation2 + $0x30] sm:$0xf0] %v797_v20  ;;  %802 = vst [vmem:[#allocation2 + $0x38] sm:$0xf0] %v798_v21  ;;  %v769_v28 = vmul.f32 %v762_v13, %v754_v26  ;;  %v770_v29 = vmul.f32 %v766_v14, %v755_v27  ;;  %2988 = vmatprep.subr.bf16.mxu0 %v2987_v24  ;;  %v940_v20 = vrot.slane %v935_v11, %v3257_v8 }
  0xa2   : > { %2990 = vmatpush1.bf16.msra.mxu0 %v2989_v25  ;;  %v944_v21 = vrot.slane %v935_v11, %v3259_v9  ;;  %vm3921_vm6 = vcmp.lt.s32.totalorder %v3255_v7, 111 }
  0xa3   : > { %771 = vst [vmem:[#allocation2 + $0x30] sm:$0xf] %v769_v28  ;;  %772 = vst [vmem:[#allocation2 + $0x38] sm:$0xf] %v770_v29  ;;  %v806_v32 = vpop.permute.xlu1 %805  ;;  %v804_v33 = vpop.permute.xlu0 %803 }
  0xa4   : > { %v808_v34 = vsel %vm3911_vm7, %v804_v33, %v806_v32  ;;  %v809_v35 = vsel %vm3911_vm7, %v806_v32, %v804_v33  ;;  %v833_v38 = vld [vmem:[#allocation2 + $0x28] sm:$0xff]  ;;  %v832_v40 = vld [vmem:[#allocation2 + $0x20] sm:$0xff]  ;;  %v998_v32 = vrot.slane %v2914_v22, %v3259_v9  ;;  %vm1071_vm7 = vcmp.lt.s32.totalorder %v3255_v7, 113 }
  0xa5   : > { %v823_v36 = vmul.f32 %v816_v30, %v808_v34  ;;  %v824_v37 = vmul.f32 %v820_v31, %v809_v35  ;;  %v994_v31 = vrot.slane %v2914_v22, %v3257_v8  ;;  %v2916_v33 = vld [vmem:[%s3928_s29 + $0x4] ss:$8 sm:$0x3] }
  0xa7   : > { %825 = vst [vmem:[#allocation2 + $0x40] sm:$0xf] %v823_v36  ;;  %826 = vst [vmem:[#allocation2 + $0x48] sm:$0xf] %v824_v37 }
  0xaa   : > { %v835_v39 = vld [vmem:[#allocation2 + $0x38] sm:$0xff]  ;;  %v834_v41 = vld [vmem:[#allocation2 + $0x30] sm:$0xff] }
  0xab   : > { %v2991_v42 = vpack.c.bf16 %v835_v39, %v833_v38  ;;  %v2993_v43 = vpack.c.bf16 %v834_v41, %v832_v40  ;;  %v1050_v39 = vrot.slane %v2916_v33, %v3257_v8  ;;  %v1054_v40 = vrot.slane %v2916_v33, %v3259_v9  ;;  %v2918_v41 = vld [vmem:[%s3928_s29 + $0x6] ss:$8 sm:$0x3] }
  0xad   : > { %2992 = vmatprep.subr.bf16.mxu0 %v2991_v42 }
  0xae   : > { %2994 = vmatpush1.bf16.msra.mxu0 %v2993_v43  ;;  %v837_v44 = vld [vmem:[#allocation2 + $0x48] sm:$0xf]  ;;  %v836_v45 = vld [vmem:[#allocation2 + $0x40] sm:$0xf] }
  0xaf   : > { %2910 = vmatprep.subr.msk.mxu0 %vm848_vm8, %v837_v44 }
  0xb2   : > { %2911 = vmatpush1.msk.msra.mxu0 %vm848_vm8, %v836_v45 }
  0xb3   : > { %2912 = vmatmul.mubr.msk.f32.vlgmr.msra.gmra.mrb[0].mxu0 %vm844_vm9, %v827_v46 }
  0xb4   : > { %1538 = vmatprep.mubr.f32.mxu0 %v3084_v2  ;;  %v842_v47 = vpop.permute.xlu0 %841 }
 0x186   : > { %v921_v48 = vpop.f32.mrb[0].mxu0 }
 0x187   : > { %v922_v49 = vadd.f32 %v921_v48, %v842_v47  ;;  %v923_v50 = vpop.f32.mrb[1].mxu0  ;;  %v1104_v48 = vrot.slane %v2918_v41, %v3257_v8 }
 0x188   : > { %v924_v51 = vadd.f32 %v923_v50, %v842_v47  ;;  %v2917_v50 = vld [vmem:[%s3928_s29 + $0x5] ss:$8 sm:$0x3] }
 0x189   : > { %v3348_v52 = vmax.f32 %v922_v49, 0.0  ;;  %v1108_v49 = vrot.slane %v2918_v41, %v3259_v9 }
 0x18a   : > { %v3350_v53 = vmax.f32 %v924_v51, 0.0 }
 0x18b   : > { %1035 = vst [vmem:[#allocation2 + $0x20] sm:$0xf] %v3348_v52  ;;  %1005 = vrot.lane.b32.xlu0 %v3348_v52, %s3086_s2  ;;  %951 = vrot.lane.b32.xlu1 %v3348_v52, %s3087_s28 }
 0x18c   : > { %1036 = vst [vmem:[#allocation2 + $0x28] sm:$0xf] %v3350_v53 }
 0x18f   : > { %928 = vrot.lane.b32.xlu0 %v3348_v52, %s3088_s21  ;;  %953 = vrot.lane.b32.xlu1 %v3350_v53, %s3087_s28 }
 0x193   : > { %981 = vrot.lane.b32.xlu0 %v3348_v52, %s3089_s1  ;;  %1007 = vrot.lane.b32.xlu1 %v3350_v53, %s3086_s2 }
 0x197   : > { %1037 = vrot.lane.b32.xlu0 %v3348_v52, %s3913_s22  ;;  %930 = vrot.lane.b32.xlu1 %v3350_v53, %s3088_s21 }
 0x19b   : > { %1091 = vrot.lane.b32.xlu0 %v3348_v52, %s3915_s20  ;;  %983 = vrot.lane.b32.xlu1 %v3350_v53, %s3089_s1 }
 0x19f   : > { %1067 = vrot.lane.b32.xlu0 %v3348_v52, %s3919_s27  ;;  %1039 = vrot.lane.b32.xlu1 %v3350_v53, %s3913_s22 }
 0x1a3   : > { %1121 = vrot.lane.b32.xlu0 %v3348_v52, %s3917_s26  ;;  %1093 = vrot.lane.b32.xlu1 %v3350_v53, %s3915_s20 }
 0x1a7   : > { %1159 = vperm.xlu0 %3061, %v1156_v54   ;;  %1069 = vrot.lane.b32.xlu1 %v3350_v53, %s3919_s27 }
 0x1ab   : > { %1123 = vrot.lane.b32.xlu1 %v3350_v53, %s3917_s26 }
 0x1fd   : > { %v1006_v56 = vpop.permute.xlu0 %1005  ;;  %v952_v57 = vpop.permute.xlu1 %951 }
 0x201   : > { %v929_v61 = vpop.permute.xlu0 %928  ;;  %v954_v62 = vpop.permute.xlu1 %953 }
 0x202   : > { %v956_v63 = vsel %vm955_vm10, %v952_v57, %v954_v62  ;;  %v957_v3 = vsel %vm955_vm10, %v954_v62, %v952_v57  ;;  %v1084_v62 = vrot.slane %v2917_v50, %v3259_v9 }
 0x203   : > { %v971_v4 = vmul.f32 %v964_v58, %v957_v3  ;;  %v972_v5 = vmul.f32 %v968_v59, %v956_v63  ;;  %v2919_v3 = vld [vmem:[%s3928_s29 + $0x7] ss:$8 sm:$0x3] }
 0x205   : > { %v975_v12 = vrot.slane %v971_v4, 4  ;;  %v976_v13 = vrot.slane %v972_v5, 4  ;;  %v982_v14 = vpop.permute.xlu0 %981  ;;  %v1008_v15 = vpop.permute.xlu1 %1007 }
 0x206   : > { %v1010_v16 = vsel %vm1009_vm11, %v1006_v56, %v1008_v15  ;;  %v1011_v17 = vsel %vm1009_vm11, %v1008_v15, %v1006_v56 }
 0x207   : > { %979 = vst [vmem:[#allocation2] sm:$0xf0] %v975_v12  ;;  %980 = vst [vmem:[#allocation2 + $0x8] sm:$0xf0] %v976_v13  ;;  %v1025_v18 = vmul.f32 %v1018_v6, %v1011_v17  ;;  %v1026_v19 = vmul.f32 %v1022_v10, %v1010_v16 }
 0x209   : > { %v1029_v23 = vrot.slane %v1025_v18, 4  ;;  %v1030_v24 = vrot.slane %v1026_v19, 4  ;;  %v931_v25 = vpop.permute.xlu1 %930  ;;  %v1038_v28 = vpop.permute.xlu0 %1037  ;;  %v1134_v19 = vrot.slane %v2919_v3, %v3257_v8 }
 0x20a   : > { %v933_v26 = vsel %vm932_vm12, %v929_v61, %v931_v25  ;;  %v934_v27 = vsel %vm932_vm12, %v931_v25, %v929_v61  ;;  %v1080_v61 = vrot.slane %v2917_v50, %v3257_v8 }
 0x20b   : > { %1033 = vst [vmem:[#allocation2 + $0x10] sm:$0xf0] %v1029_v23  ;;  %1034 = vst [vmem:[#allocation2 + $0x18] sm:$0xf0] %v1030_v24  ;;  %v947_v29 = vmul.f32 %v940_v20, %v934_v27  ;;  %v948_v30 = vmul.f32 %v944_v21, %v933_v26  ;;  %v1138_v20 = vrot.slane %v2919_v3, %v3259_v9 }
 0x20d   : > { %949 = vst [vmem:[#allocation2] sm:$0xf] %v947_v29  ;;  %950 = vst [vmem:[#allocation2 + $0x8] sm:$0xf] %v948_v30  ;;  %v984_v34 = vpop.permute.xlu1 %983  ;;  %v1092_v42 = vpop.permute.xlu0 %1091 }
 0x20e   : > { %v986_v35 = vsel %vm985_vm13, %v982_v14, %v984_v34  ;;  %v987_v36 = vsel %vm985_vm13, %v984_v34, %v982_v14  ;;  %v1145_v34 = vld [vmem:[%s3877_s4] sm:$0xf] }
 0x20f   : > { %v1001_v37 = vmul.f32 %v994_v31, %v987_v36  ;;  %v1002_v38 = vmul.f32 %v998_v32, %v986_v35 }
 0x211   : > { %1003 = vst [vmem:[#allocation2 + $0x10] sm:$0xf] %v1001_v37  ;;  %1004 = vst [vmem:[#allocation2 + $0x18] sm:$0xf] %v1002_v38  ;;  %v1040_v43 = vpop.permute.xlu1 %1039  ;;  %v1068_v58 = vpop.permute.xlu0 %1067 }
 0x212   : > { %v1042_v44 = vsel %vm1041_vm14, %v1038_v28, %v1040_v43  ;;  %v1043_v45 = vsel %vm1041_vm14, %v1040_v43, %v1038_v28 }
 0x213   : > { %v1057_v46 = vmul.f32 %v1050_v39, %v1042_v44  ;;  %v1058_v47 = vmul.f32 %v1054_v40, %v1043_v45  ;;  %v1711_v45 = vld [vmem:[%s3882_s9] sm:$0xf] }
 0x214   : > { %v1147_v63 = vld [vmem:[#allocation2 + $0x8] sm:$0xff]  ;;  %v1146_v5 = vld [vmem:[#allocation2] sm:$0xff] }
 0x215   : > { %v1061_v51 = vrot.slane %v1057_v46, 4  ;;  %v1062_v54 = vrot.slane %v1058_v47, 4  ;;  %v1094_v55 = vpop.permute.xlu1 %1093  ;;  %v1122_v21 = vpop.permute.xlu0 %1121  ;;  %v1459_v46 = vld [vmem:[%s3880_s7] sm:$0xf] }
 0x216   : > { %v1096_v56 = vsel %vm1095_vm15, %v1092_v42, %v1094_v55  ;;  %v1097_v57 = vsel %vm1095_vm15, %v1094_v55, %v1092_v42  ;;  %v2923_v47 = vld [vmem:[%s3928_s29 + $0x1] ss:$8 sm:$0x3] }
 0x217   : > { %1065 = vst [vmem:[#allocation2 + $0x20] sm:$0xf0] %v1061_v51  ;;  %1066 = vst [vmem:[#allocation2 + $0x28] sm:$0xf0] %v1062_v54  ;;  %v1111_v59 = vmul.f32 %v1104_v48, %v1096_v56  ;;  %v1112_v60 = vmul.f32 %v1108_v49, %v1097_v57  ;;  %v1279_v48 = vrot.slane %v2923_v47, %v3257_v8 }
 0x218   : > { %v1149_v4 = vld [vmem:[#allocation2 + $0x18] sm:$0xff]  ;;  %v1148_v6 = vld [vmem:[#allocation2 + $0x10] sm:$0xff]  ;;  %v1283_v49 = vrot.slane %v2923_v47, %v3259_v9  ;;  %v2925_v51 = vld [vmem:[%s3928_s29 + $0x3] ss:$8 sm:$0x3] }
 0x219   : > { %v1115_v10 = vrot.slane %v1111_v59, 4  ;;  %v1116_v11 = vrot.slane %v1112_v60, 4  ;;  %v1070_v12 = vpop.permute.xlu1 %1069  ;;  %v2995_v13 = vpack.c.bf16 %v1149_v4, %v1147_v63  ;;  %v2997_v14 = vpack.c.bf16 %v1148_v6, %v1146_v5 }
 0x21a   : > { %v1072_v15 = vsel %vm1071_vm7, %v1068_v58, %v1070_v12  ;;  %v1073_v16 = vsel %vm1071_vm7, %v1070_v12, %v1068_v58  ;;  %v1329_v59 = vrot.slane %v2925_v51, %v3257_v8  ;;  %v1333_v60 = vrot.slane %v2925_v51, %v3259_v9 }
 0x21b   : > { %1119 = vst [vmem:[#allocation2 + $0x30] sm:$0xf0] %v1115_v10  ;;  %1120 = vst [vmem:[#allocation2 + $0x38] sm:$0xf0] %v1116_v11  ;;  %v1087_v17 = vmul.f32 %v1080_v61, %v1072_v15  ;;  %v1088_v18 = vmul.f32 %v1084_v62, %v1073_v16  ;;  %2996 = vmatprep.subr.bf16.mxu1 %v2995_v13 }
 0x21c   : > { %2998 = vmatpush1.bf16.msra.mxu1 %v2997_v14  ;;  %v1252_v62 = vld [vmem:[%s3928_s29] ss:$8 sm:$0x3]  ;;  %v2924_v15 = vld [vmem:[%s3928_s29 + $0x2] ss:$8 sm:$0x3] }
 0x21d   : > { %1089 = vst [vmem:[#allocation2 + $0x30] sm:$0xf] %v1087_v17  ;;  %1090 = vst [vmem:[#allocation2 + $0x38] sm:$0xf] %v1088_v18  ;;  %v1124_v22 = vpop.permute.xlu1 %1123  ;;  %v1257_v12 = vrot.slane %v1252_v62, %v3257_v8  ;;  %v1261_v13 = vrot.slane %v1252_v62, %v3259_v9 }
 0x21e   : > { %v1126_v23 = vsel %vm3921_vm6, %v1122_v21, %v1124_v22  ;;  %v1127_v24 = vsel %vm3921_vm6, %v1124_v22, %v1122_v21  ;;  %v1151_v27 = vld [vmem:[#allocation2 + $0x28] sm:$0xff]  ;;  %v1150_v29 = vld [vmem:[#allocation2 + $0x20] sm:$0xff] }
 0x21f   : > { %v1141_v25 = vmul.f32 %v1134_v19, %v1126_v23  ;;  %v1142_v26 = vmul.f32 %v1138_v20, %v1127_v24  ;;  %v1307_v23 = vrot.slane %v2924_v15, %v3257_v8  ;;  %v1311_v24 = vrot.slane %v2924_v15, %v3259_v9 }
 0x221   : > { %1143 = vst [vmem:[#allocation2 + $0x40] sm:$0xf] %v1141_v25  ;;  %1144 = vst [vmem:[#allocation2 + $0x48] sm:$0xf] %v1142_v26 }
 0x222   : > { %v2926_v26 = vld [vmem:[%s3928_s29 + $0x4] ss:$8 sm:$0x3] }
 0x224   : > { %v1153_v28 = vld [vmem:[#allocation2 + $0x38] sm:$0xff]  ;;  %v1152_v30 = vld [vmem:[#allocation2 + $0x30] sm:$0xff] }
 0x225   : > { %v2999_v31 = vpack.c.bf16 %v1153_v28, %v1151_v27  ;;  %v3001_v32 = vpack.c.bf16 %v1152_v30, %v1150_v29 }
 0x226   : > { %v1160_v36 = vpop.permute.xlu0 %1159 }
 0x227   : > { %3000 = vmatprep.subr.bf16.mxu1 %v2999_v31 }
 0x228   : > { %3002 = vmatpush1.bf16.msra.mxu1 %v3001_v32  ;;  %v1155_v33 = vld [vmem:[#allocation2 + $0x48] sm:$0xf]  ;;  %v1154_v35 = vld [vmem:[#allocation2 + $0x40] sm:$0xf]  ;;  %v1359_v32 = vrot.slane %v2926_v26, %v3257_v8 }
 0x229   : > { %2920 = vmatprep.subr.msk.mxu1 %vm848_vm8, %v1155_v33  ;;  %v1363_v33 = vrot.slane %v2926_v26, %v3259_v9 }
 0x22c   : > { %2921 = vmatpush1.msk.msra.mxu1 %vm848_vm8, %v1154_v35  ;;  %v2928_v35 = vld [vmem:[%s3928_s29 + $0x6] ss:$8 sm:$0x3] }
 0x22d   : > { %2922 = vmatmul.mubr.msk.f32.vlgmr.msra.gmra.mrb[0].mxu1 %vm844_vm9, %v1145_v34 }
 0x22e   : > { %1624 = vmatprep.mubr.f32.mxu1 %v3084_v2 }
 0x300   : > { %v1237_v37 = vpop.f32.mrb[0].mxu1 }
 0x301   : > { %v1238_v38 = vadd.f32 %v1237_v37, %v1160_v36  ;;  %v1239_v39 = vpop.f32.mrb[1].mxu1 }
 0x302   : > { %v1240_v40 = vadd.f32 %v1239_v39, %v1160_v36 }
 0x303   : > { %v3476_v41 = vmax.f32 %v1238_v38, 0.0 }
 0x304   : > { %v3478_v42 = vmax.f32 %v1240_v40, 0.0 }
 0x305   : > { %v1244_v43 = vadd.f32 %v3476_v41, %v3210_v0 }
 0x306   : > { %v1245_v44 = vadd.f32 %v3478_v42, %v3219_v1 }
 0x307   : > { %1346 = vst [vmem:[#allocation2 + $0x20] sm:$0xf] %v1244_v43  ;;  %1268 = vrot.lane.b32.xlu1 %v1244_v43, %s3087_s28 }
 0x308   : > { %1347 = vst [vmem:[#allocation2 + $0x28] sm:$0xf] %v1245_v44  ;;  %1270 = vrot.lane.b32.xlu0 %v1245_v44, %s3087_s28 }
 0x30b   : > { %1318 = vrot.lane.b32.xlu1 %v1244_v43, %s3086_s2 }
 0x30c   : > { %1320 = vrot.lane.b32.xlu0 %v1245_v44, %s3086_s2 }
 0x30f   : > { %1246 = vrot.lane.b32.xlu1 %v1244_v43, %s3088_s21 }
 0x310   : > { %1248 = vrot.lane.b32.xlu0 %v1245_v44, %s3088_s21 }
 0x313   : > { %1296 = vrot.lane.b32.xlu1 %v1244_v43, %s3089_s1 }
 0x314   : > { %1298 = vrot.lane.b32.xlu0 %v1245_v44, %s3089_s1 }
 0x317   : > { %1348 = vrot.lane.b32.xlu1 %v1244_v43, %s3913_s22 }
 0x318   : > { %1350 = vrot.lane.b32.xlu0 %v1245_v44, %s3913_s22  ;;  %s3936_s22 = smov 98  }
 0x31b   : > { %1398 = vrot.lane.b32.xlu1 %v1244_v43, %s3915_s20 }
 0x31c   : > { %1400 = vrot.lane.b32.xlu0 %v1245_v44, %s3915_s20  ;;  %s3937_s20 = smov 94  }
 0x31f   : > { %1376 = vrot.lane.b32.xlu1 %v1244_v43, %s3919_s27 }
 0x320   : > { %1378 = vrot.lane.b32.xlu0 %v1245_v44, %s3919_s27  ;;  %s3931_s27 = smov 2  }
 0x323   : > { %1426 = vrot.lane.b32.xlu1 %v1244_v43, %s3917_s26  ;;  %v1409_v43 = vrot.slane %v2928_v35, %v3257_v8 }
 0x324   : > { %1428 = vrot.lane.b32.xlu0 %v1245_v44, %s3917_s26  ;;  %v1413_v44 = vrot.slane %v2928_v35, %v3259_v9  ;;  %s3930_s26 = smov 32  }
 0x327   : > { %1462 = vperm.xlu1 %3062, %v1459_v46   ;;  %v2927_v46 = vld [vmem:[%s3928_s29 + $0x5] ss:$8 sm:$0x3] }
 0x328   : > { %1714 = vperm.xlu0 %3061, %v1711_v45  }
 0x379   : > { %v1269_v50 = vpop.permute.xlu1 %1268 }
 0x37a   : > { %v1271_v54 = vpop.permute.xlu0 %1270 }
 0x37b   : > { %v1272_v55 = vsel %vm955_vm10, %v1269_v50, %v1271_v54  ;;  %v1273_v56 = vsel %vm955_vm10, %v1271_v54, %v1269_v50 }
 0x37c   : > { %v1286_v57 = vmul.f32 %v1279_v48, %v1273_v56  ;;  %v1287_v58 = vmul.f32 %v1283_v49, %v1272_v55  ;;  %v1387_v56 = vrot.slane %v2927_v46, %v3257_v8 }
 0x37d   : > { %v1319_v61 = vpop.permute.xlu1 %1318 }
 0x37e   : > { %v1290_v63 = vrot.slane %v1286_v57, 4  ;;  %v1291_v3 = vrot.slane %v1287_v58, 4  ;;  %v1321_v4 = vpop.permute.xlu0 %1320  ;;  %v1391_v57 = vrot.slane %v2927_v46, %v3259_v9 }
 0x37f   : > { %v1322_v5 = vsel %vm1009_vm11, %v1319_v61, %v1321_v4  ;;  %v1323_v6 = vsel %vm1009_vm11, %v1321_v4, %v1319_v61 }
 0x380   : > { %1294 = vst [vmem:[#allocation2] sm:$0xf0] %v1290_v63  ;;  %1295 = vst [vmem:[#allocation2 + $0x8] sm:$0xf0] %v1291_v3  ;;  %v1336_v10 = vmul.f32 %v1329_v59, %v1323_v6  ;;  %v1337_v11 = vmul.f32 %v1333_v60, %v1322_v5 }
 0x381   : > { %v1247_v14 = vpop.permute.xlu1 %1246  ;;  %v2929_v59 = vld [vmem:[%s3928_s29 + $0x7] ss:$8 sm:$0x3] }
 0x382   : > { %v1340_v16 = vrot.slane %v1336_v10, 4  ;;  %v1341_v17 = vrot.slane %v1337_v11, 4  ;;  %v1249_v18 = vpop.permute.xlu0 %1248  ;;  %v1437_v15 = vrot.slane %v2929_v59, %v3257_v8 }
 0x383   : > { %v1250_v19 = vsel %vm932_vm12, %v1247_v14, %v1249_v18  ;;  %v1251_v20 = vsel %vm932_vm12, %v1249_v18, %v1247_v14 }
 0x384   : > { %1344 = vst [vmem:[#allocation2 + $0x10] sm:$0xf0] %v1340_v16  ;;  %1345 = vst [vmem:[#allocation2 + $0x18] sm:$0xf0] %v1341_v17  ;;  %v1264_v21 = vmul.f32 %v1257_v12, %v1251_v20  ;;  %v1265_v22 = vmul.f32 %v1261_v13, %v1250_v19  ;;  %v1441_v16 = vrot.slane %v2929_v59, %v3259_v9 }
 0x385   : > { %v1297_v25 = vpop.permute.xlu1 %1296 }
 0x386   : > { %1266 = vst [vmem:[#allocation2] sm:$0xf] %v1264_v21  ;;  %1267 = vst [vmem:[#allocation2 + $0x8] sm:$0xf] %v1265_v22  ;;  %v1299_v27 = vpop.permute.xlu0 %1298 }
 0x387   : > { %v1300_v28 = vsel %vm985_vm13, %v1297_v25, %v1299_v27  ;;  %v1301_v29 = vsel %vm985_vm13, %v1299_v27, %v1297_v25 }
 0x388   : > { %v1314_v30 = vmul.f32 %v1307_v23, %v1301_v29  ;;  %v1315_v31 = vmul.f32 %v1311_v24, %v1300_v28 }
 0x389   : > { %v1349_v34 = vpop.permute.xlu1 %1348 }
 0x38a   : > { %1316 = vst [vmem:[#allocation2 + $0x10] sm:$0xf] %v1314_v30  ;;  %1317 = vst [vmem:[#allocation2 + $0x18] sm:$0xf] %v1315_v31  ;;  %v1351_v36 = vpop.permute.xlu0 %1350  ;;  %v1448_v30 = vld [vmem:[%s3879_s6] sm:$0xf] }
 0x38b   : > { %v1352_v37 = vsel %vm1041_vm14, %v1349_v34, %v1351_v36  ;;  %v1353_v38 = vsel %vm1041_vm14, %v1351_v36, %v1349_v34 }
 0x38c   : > { %v1366_v39 = vmul.f32 %v1359_v32, %v1352_v37  ;;  %v1367_v40 = vmul.f32 %v1363_v33, %v1353_v38 }
 0x38d   : > { %v1399_v45 = vpop.permute.xlu1 %1398  ;;  %v1450_v58 = vld [vmem:[#allocation2 + $0x8] sm:$0xff]  ;;  %v1449_v62 = vld [vmem:[#allocation2] sm:$0xff] }
 0x38e   : > { %v1370_v47 = vrot.slane %v1366_v39, 4  ;;  %v1371_v48 = vrot.slane %v1367_v40, 4  ;;  %v1401_v49 = vpop.permute.xlu0 %1400  ;;  %v2933_v39 = vld [vmem:[%s3881_s8 + $0x4] sm:$0xf]  ;;  %v1547_v40 = vld [vmem:[%s3881_s8] sm:$0xf] }
 0x38f   : > { %v1402_v50 = vsel %vm1095_vm15, %v1399_v45, %v1401_v49  ;;  %v1403_v51 = vsel %vm1095_vm15, %v1401_v49, %v1399_v45  ;;  %v2183_v49 = vld [vmem:[%s3886_s13] sm:$0xf] }
 0x390   : > { %1374 = vst [vmem:[#allocation2 + $0x20] sm:$0xf0] %v1370_v47  ;;  %1375 = vst [vmem:[#allocation2 + $0x28] sm:$0xf0] %v1371_v48  ;;  %v1416_v54 = vmul.f32 %v1409_v43, %v1402_v50  ;;  %v1417_v55 = vmul.f32 %v1413_v44, %v1403_v51  ;;  %v1932_v48 = vld [vmem:[%s3884_s11] sm:$0xf] }
 0x391   : > { %v1377_v60 = vpop.permute.xlu1 %1376  ;;  %v1452_v61 = vld [vmem:[#allocation2 + $0x18] sm:$0xff]  ;;  %v1451_v63 = vld [vmem:[#allocation2 + $0x10] sm:$0xff] }
 0x392   : > { %v1420_v3 = vrot.slane %v1416_v54, 4  ;;  %v1421_v4 = vrot.slane %v1417_v55, 4  ;;  %v1379_v5 = vpop.permute.xlu0 %1378  ;;  %v3003_v6 = vpack.c.bf16 %v1452_v61, %v1450_v58  ;;  %v3005_v10 = vpack.c.bf16 %v1451_v63, %v1449_v62  ;;  %v2941_v50 = vld [vmem:[%s3928_s29 + $0x11] ss:$8 sm:$0x3] }
 0x393   : > { %v1380_v11 = vsel %vm1071_vm7, %v1377_v60, %v1379_v5  ;;  %v1381_v12 = vsel %vm1071_vm7, %v1379_v5, %v1377_v60  ;;  %v1752_v51 = vrot.slane %v2941_v50, %v3257_v8  ;;  %v1756_v54 = vrot.slane %v2941_v50, %v3259_v9 }
 0x394   : > { %1424 = vst [vmem:[#allocation2 + $0x30] sm:$0xf0] %v1420_v3  ;;  %1425 = vst [vmem:[#allocation2 + $0x38] sm:$0xf0] %v1421_v4  ;;  %v1394_v13 = vmul.f32 %v1387_v56, %v1380_v11  ;;  %v1395_v14 = vmul.f32 %v1391_v57, %v1381_v12  ;;  %3004 = vmatprep.subr.bf16.mxu0 %v3003_v6 }
 0x395   : > { %3006 = vmatpush1.bf16.msra.mxu0 %v3005_v10  ;;  %v1427_v17 = vpop.permute.xlu1 %1426  ;;  %v2943_v56 = vld [vmem:[%s3928_s29 + $0x13] ss:$8 sm:$0x3]  ;;  %v2940_v4 = vld [vmem:[%s3928_s29 + $0x10] ss:$8 sm:$0x3] }
 0x396   : > { %1396 = vst [vmem:[#allocation2 + $0x30] sm:$0xf] %v1394_v13  ;;  %1397 = vst [vmem:[#allocation2 + $0x38] sm:$0xf] %v1395_v14  ;;  %v1429_v18 = vpop.permute.xlu0 %1428  ;;  %v1802_v62 = vrot.slane %v2943_v56, %v3257_v8  ;;  %v1806_v63 = vrot.slane %v2943_v56, %v3259_v9 }
 0x397   : > { %v1430_v19 = vsel %vm3921_vm6, %v1427_v17, %v1429_v18  ;;  %v1431_v20 = vsel %vm3921_vm6, %v1429_v18, %v1427_v17  ;;  %v1454_v23 = vld [vmem:[#allocation2 + $0x28] sm:$0xff]  ;;  %v1453_v25 = vld [vmem:[#allocation2 + $0x20] sm:$0xff]  ;;  %vm1550_vm6 = vcmask 31744   ;;  %v2942_v18 = vld [vmem:[%s3928_s29 + $0x12] ss:$8 sm:$0x3] }
 0x398   : > { %v1444_v21 = vmul.f32 %v1437_v15, %v1430_v19  ;;  %v1445_v22 = vmul.f32 %v1441_v16, %v1431_v20  ;;  %v1730_v15 = vrot.slane %v2940_v4, %v3257_v8  ;;  %v1734_v16 = vrot.slane %v2940_v4, %v3259_v9 }
 0x39a   : > { %1446 = vst [vmem:[#allocation2 + $0x40] sm:$0xf] %v1444_v21  ;;  %1447 = vst [vmem:[#allocation2 + $0x48] sm:$0xf] %v1445_v22 }
 0x39d   : > { %v1456_v24 = vld [vmem:[#allocation2 + $0x38] sm:$0xff]  ;;  %v1455_v26 = vld [vmem:[#allocation2 + $0x30] sm:$0xff] }
 0x39e   : > { %v3007_v27 = vpack.c.bf16 %v1456_v24, %v1454_v23  ;;  %v3009_v28 = vpack.c.bf16 %v1455_v26, %v1453_v25  ;;  %v1780_v26 = vrot.slane %v2942_v18, %v3257_v8 }
 0x3a0   : > { %3008 = vmatprep.subr.bf16.mxu0 %v3007_v27  ;;  %v1784_v27 = vrot.slane %v2942_v18, %v3259_v9 }
 0x3a1   : > { %3010 = vmatpush1.bf16.msra.mxu0 %v3009_v28  ;;  %v1458_v29 = vld [vmem:[#allocation2 + $0x48] sm:$0xf]  ;;  %v1457_v31 = vld [vmem:[#allocation2 + $0x40] sm:$0xf] }
 0x3a2   : > { %2930 = vmatprep.subr.msk.mxu0 %vm848_vm8, %v1458_v29  ;;  %v2944_v29 = vld [vmem:[%s3928_s29 + $0x14] ss:$8 sm:$0x3] }
 0x3a5   : > { %2931 = vmatpush1.msk.msra.mxu0 %vm848_vm8, %v1457_v31 }
 0x3a6   : > { %2932 = vmatmul.mubr.msk.f32.vlgmr.msra.gmra.mrb[2].mxu0 %vm844_vm9, %v1448_v30  ;;  %v1463_v32 = vpop.permute.xlu1 %1462 }
 0x3a7   : > { %2096 = vmatprep.mubr.f32.mxu0 %v3084_v2  ;;  %v1715_v43 = vpop.permute.xlu0 %1714 }
 0x479   : > { %v1540_v33 = vpop.f32.mrb[2].mxu0 }
 0x47a   : > { %v3585_v34 = vadd.f32 %v1540_v33, %v1463_v32  ;;  %v1542_v35 = vpop.f32.mrb[3].mxu0 }
 0x47b   : > { %v3587_v36 = vadd.f32 %v1542_v35, %v1463_v32 }
 0x47c   : > { %v1545_v38 = vmax.f32 %v3585_v34, 0.0 }
 0x47d   : > { %v1546_v37 = vmax.f32 %v3587_v36, 0.0 }
 0x47f   : > { %2934 = vmatprep.subr.msk.mxu1 %vm848_vm8, %v1546_v37 }
 0x480   : > { %2935 = vmatpush1.msk.msra.mxu1 %vm848_vm8, %v1545_v38 }
 0x481   : > { %2936 = vmatmul.mubr.msk.f32.vlgmr.msra.gmra.mrb[2].mxu1 %vm1550_vm6, %v2933_v39  ;;  %2937 = vmatprep.subr.msk.mxu1 %vm848_vm8, %v3478_v42  ;;  %v1832_v39 = vrot.slane %v2944_v29, %v3257_v8 }
 0x482   : > { %2938 = vmatpush1.msk.msra.mxu1 %vm848_vm8, %v3476_v41  ;;  %1704 = vmatprep.mubr.f32.mxu1 %v3084_v2 }
 0x489   : > { %2939 = vmatmul.mubr.msk.f32.vlgmr.msra.gmra.mrb[2].mxu1 %vm1550_vm6, %v1547_v40  ;;  %v1836_v40 = vrot.slane %v2944_v29, %v3259_v9 }
 0x48a   : > { %2011 = vmatprep.mubr.f32.mxu1 %v3084_v2 }
 0x55c   : > { %v1706_v44 = vpop.f32.mrb[2].mxu1 }
 0x55d   : > { %v1717_v45 = vadd.f32 %v1715_v43, %v1706_v44  ;;  %v1708_v46 = vpop.f32.mrb[3].mxu1  ;;  %v2946_v44 = vld [vmem:[%s3928_s29 + $0x16] ss:$8 sm:$0x3] }
 0x55e   : > { %v1718_v47 = vadd.f32 %v1715_v43, %v1708_v46  ;;  %v1882_v50 = vrot.slane %v2946_v44, %v3257_v8 }
 0x55f   : > { %1819 = vst [vmem:[#allocation2 + $0x20] sm:$0xf] %v1717_v45  ;;  %1741 = vrot.lane.b32.xlu1 %v1717_v45, %s3930_s26 }
 0x560   : > { %1820 = vst [vmem:[#allocation2 + $0x28] sm:$0xf] %v1718_v47  ;;  %1743 = vrot.lane.b32.xlu0 %v1718_v47, %s3930_s26  ;;  %s3948_s26 = sshll.u32 %s3950_s30, 3 }
 0x563   : > { %1791 = vrot.lane.b32.xlu1 %v1717_v45, %s3931_s27 }
 0x564   : > { %1793 = vrot.lane.b32.xlu0 %v1718_v47, %s3931_s27 }
 0x567   : > { %1719 = vrot.lane.b32.xlu1 %v1717_v45, %s3932_s25 }
 0x568   : > { %1721 = vrot.lane.b32.xlu0 %v1718_v47, %s3932_s25 }
 0x56b   : > { %1769 = vrot.lane.b32.xlu1 %v1717_v45, %s3933_s3 }
 0x56c   : > { %1771 = vrot.lane.b32.xlu0 %v1718_v47, %s3933_s3  ;;  %s602_s3 = scalar_lea.vmem %s3892_s19, %s3948_s26 }
 0x56f   : > { %1821 = vrot.lane.b32.xlu1 %v1717_v45, %s3934_s23 }
 0x570   : > { %1823 = vrot.lane.b32.xlu0 %v1718_v47, %s3934_s23  ;;  %s3942_s23 = smov 127  }
 0x573   : > { %1871 = vrot.lane.b32.xlu1 %v1717_v45, %s3935_s24 }
 0x574   : > { %1873 = vrot.lane.b32.xlu0 %v1718_v47, %s3935_s24  ;;  %s3943_s24 = smov 112  }
 0x577   : > { %1849 = vrot.lane.b32.xlu1 %v1717_v45, %s3936_s22 }
 0x578   : > { %1851 = vrot.lane.b32.xlu0 %v1718_v47, %s3936_s22 }
 0x57b   : > { %1899 = vrot.lane.b32.xlu1 %v1717_v45, %s3937_s20 }
 0x57c   : > { %1901 = vrot.lane.b32.xlu0 %v1718_v47, %s3937_s20 }
 0x57f   : > { %1935 = vperm.xlu1 %3062, %v1932_v48  }
 0x580   : > { %2186 = vperm.xlu0 %3061, %v2183_v49  }
 0x5d1   : > { %v1742_v55 = vpop.permute.xlu1 %1741 }
 0x5d2   : > { %v1744_v57 = vpop.permute.xlu0 %1743 }
 0x5d3   : > { %v1745_v58 = vsel %vm637_vm2, %v1742_v55, %v1744_v57  ;;  %v1746_v59 = vsel %vm637_vm2, %v1744_v57, %v1742_v55  ;;  %v2945_v55 = vld [vmem:[%s3928_s29 + $0x15] ss:$8 sm:$0x3]  ;;  %vm3940_vm2 = vcmp.lt.s32.totalorder %v3255_v7, 94 }
 0x5d4   : > { %v1759_v60 = vmul.f32 %v1752_v51, %v1746_v59  ;;  %v1760_v61 = vmul.f32 %v1756_v54, %v1745_v58  ;;  %v1886_v51 = vrot.slane %v2946_v44, %v3259_v9 }
 0x5d5   : > { %v1792_v3 = vpop.permute.xlu1 %1791 }
 0x5d6   : > { %v1763_v5 = vrot.slane %v1759_v60, 4  ;;  %v1764_v6 = vrot.slane %v1760_v61, 4  ;;  %v1794_v10 = vpop.permute.xlu0 %1793 }
 0x5d7   : > { %v1795_v11 = vsel %vm691_vm0, %v1792_v3, %v1794_v10  ;;  %v1796_v12 = vsel %vm691_vm0, %v1794_v10, %v1792_v3  ;;  %v1864_v3 = vrot.slane %v2945_v55, %v3259_v9  ;;  %vm3938_vm0 = vcmp.lt.s32.totalorder %v3255_v7, 98 }
 0x5d8   : > { %1767 = vst [vmem:[#allocation2] sm:$0xf0] %v1763_v5  ;;  %1768 = vst [vmem:[#allocation2 + $0x8] sm:$0xf0] %v1764_v6  ;;  %v1809_v13 = vmul.f32 %v1802_v62, %v1796_v12  ;;  %v1810_v14 = vmul.f32 %v1806_v63, %v1795_v11  ;;  %v1860_v63 = vrot.slane %v2945_v55, %v3257_v8 }
 0x5d9   : > { %v1720_v17 = vpop.permute.xlu1 %1719  ;;  %v2947_v5 = vld [vmem:[%s3928_s29 + $0x17] ss:$8 sm:$0x3] }
 0x5da   : > { %v1813_v19 = vrot.slane %v1809_v13, 4  ;;  %v1814_v20 = vrot.slane %v1810_v14, 4  ;;  %v1722_v21 = vpop.permute.xlu0 %1721 }
 0x5db   : > { %v1723_v22 = vsel %vm613_vm1, %v1720_v17, %v1722_v21  ;;  %v1724_v23 = vsel %vm613_vm1, %v1722_v21, %v1720_v17  ;;  %vm3939_vm1 = vmmov %vm3938_vm0 }
 0x5dc   : > { %1817 = vst [vmem:[#allocation2 + $0x10] sm:$0xf0] %v1813_v19  ;;  %1818 = vst [vmem:[#allocation2 + $0x18] sm:$0xf0] %v1814_v20  ;;  %v1737_v24 = vmul.f32 %v1730_v15, %v1724_v23  ;;  %v1738_v25 = vmul.f32 %v1734_v16, %v1723_v22  ;;  %v1910_v22 = vrot.slane %v2947_v5, %v3257_v8 }
 0x5dd   : > { %v1770_v28 = vpop.permute.xlu1 %1769  ;;  %v1914_v23 = vrot.slane %v2947_v5, %v3259_v9 }
 0x5de   : > { %1739 = vst [vmem:[#allocation2] sm:$0xf] %v1737_v24  ;;  %1740 = vst [vmem:[#allocation2 + $0x8] sm:$0xf] %v1738_v25  ;;  %v1772_v30 = vpop.permute.xlu0 %1771 }
 0x5df   : > { %v1773_v31 = vsel %vm667_vm3, %v1770_v28, %v1772_v30  ;;  %v1774_v32 = vsel %vm667_vm3, %v1772_v30, %v1770_v28  ;;  %vm3941_vm3 = vmmov %vm3940_vm2 }
 0x5e0   : > { %v1787_v33 = vmul.f32 %v1780_v26, %v1774_v32  ;;  %v1788_v35 = vmul.f32 %v1784_v27, %v1773_v31 }
 0x5e1   : > { %v1822_v43 = vpop.permute.xlu1 %1821 }
 0x5e2   : > { %1789 = vst [vmem:[#allocation2 + $0x10] sm:$0xf] %v1787_v33  ;;  %1790 = vst [vmem:[#allocation2 + $0x18] sm:$0xf] %v1788_v35  ;;  %v1824_v45 = vpop.permute.xlu0 %1823 }
 0x5e3   : > { %v1825_v46 = vsel %vm723_vm4, %v1822_v43, %v1824_v45  ;;  %v1826_v47 = vsel %vm723_vm4, %v1824_v45, %v1822_v43  ;;  %v1921_v43 = vld [vmem:[%s3883_s10] sm:$0xf]  ;;  %v2968_v45 = vld [vmem:[%s3889_s16 + $0x4] sm:$0xf]  ;;  %vm3946_vm4 = vcmp.lt.s32.totalorder %v3255_v7, 111 }
 0x5e4   : > { %v1839_v48 = vmul.f32 %v1832_v39, %v1825_v46  ;;  %v1840_v49 = vmul.f32 %v1836_v40, %v1826_v47  ;;  %v2393_v7 = vld [vmem:[%s3887_s14] sm:$0xf] }
 0x5e5   : > { %v1872_v54 = vpop.permute.xlu1 %1871  ;;  %v1923_v4 = vld [vmem:[#allocation2 + $0x8] sm:$0xff]  ;;  %v1922_v11 = vld [vmem:[#allocation2] sm:$0xff] }
 0x5e6   : > { %v1843_v56 = vrot.slane %v1839_v48, 4  ;;  %v1844_v57 = vrot.slane %v1840_v49, 4  ;;  %v1874_v58 = vpop.permute.xlu0 %1873  ;;  %v2951_v49 = vld [vmem:[%s3885_s12 + $0x4] sm:$0xf] }
 0x5e7   : > { %v1875_v59 = vsel %vm777_vm5, %v1872_v54, %v1874_v58  ;;  %v1876_v60 = vsel %vm777_vm5, %v1874_v58, %v1872_v54  ;;  %vm3947_vm5 = vmmov %vm3946_vm4 }
 0x5e8   : > { %1847 = vst [vmem:[#allocation2 + $0x20] sm:$0xf0] %v1843_v56  ;;  %1848 = vst [vmem:[#allocation2 + $0x28] sm:$0xf0] %v1844_v57  ;;  %v1889_v61 = vmul.f32 %v1882_v50, %v1875_v59  ;;  %v1890_v62 = vmul.f32 %v1886_v51, %v1876_v60 }
 0x5e9   : > { %v1850_v6 = vpop.permute.xlu1 %1849  ;;  %v1925_v10 = vld [vmem:[#allocation2 + $0x18] sm:$0xff]  ;;  %v1924_v12 = vld [vmem:[#allocation2 + $0x10] sm:$0xff]  ;;  %v2958_v56 = vld [vmem:[%s3928_s29 + $0x1] ss:$8 sm:$0x3] }
 0x5ea   : > { %v1893_v13 = vrot.slane %v1889_v61, 4  ;;  %v1894_v14 = vrot.slane %v1890_v62, 4  ;;  %v1852_v15 = vpop.permute.xlu0 %1851  ;;  %v3011_v16 = vpack.c.bf16 %v1925_v10, %v1923_v4  ;;  %v3013_v17 = vpack.c.bf16 %v1924_v12, %v1922_v11  ;;  %v2960_v60 = vld [vmem:[%s3928_s29 + $0x3] ss:$8 sm:$0x3] }
 0x5eb   : > { %v1853_v18 = vsel %vm3938_vm0, %v1850_v6, %v1852_v15  ;;  %v1854_v19 = vsel %vm3939_vm1, %v1852_v15, %v1850_v6  ;;  %v2224_v57 = vrot.slane %v2958_v56, %v3257_v8  ;;  %v2228_v58 = vrot.slane %v2958_v56, %v3259_v9  ;;  %v2197_v11 = vld [vmem:[%s3928_s29] ss:$8 sm:$0x3] }
 0x5ec   : > { %1897 = vst [vmem:[#allocation2 + $0x30] sm:$0xf0] %v1893_v13  ;;  %1898 = vst [vmem:[#allocation2 + $0x38] sm:$0xf0] %v1894_v14  ;;  %v1867_v20 = vmul.f32 %v1860_v63, %v1853_v18  ;;  %v1868_v21 = vmul.f32 %v1864_v3, %v1854_v19  ;;  %3012 = vmatprep.subr.bf16.mxu1 %v3011_v16  ;;  %v2274_v5 = vrot.slane %v2960_v60, %v3257_v8 }
 0x5ed   : > { %v1900_v24 = vpop.permute.xlu1 %1899  ;;  %3014 = vmatpush1.bf16.msra.mxu1 %v3013_v17  ;;  %v2278_v6 = vrot.slane %v2960_v60, %v3259_v9  ;;  %v2202_v19 = vrot.slane %v2197_v11, %v3257_v8 }
 0x5ee   : > { %1869 = vst [vmem:[#allocation2 + $0x30] sm:$0xf] %v1867_v20  ;;  %1870 = vst [vmem:[#allocation2 + $0x38] sm:$0xf] %v1868_v21  ;;  %v1902_v25 = vpop.permute.xlu0 %1901  ;;  %v2206_v20 = vrot.slane %v2197_v11, %v3259_v9 }
 0x5ef   : > { %v1903_v26 = vsel %vm3940_vm2, %v1900_v24, %v1902_v25  ;;  %v1904_v27 = vsel %vm3941_vm3, %v1902_v25, %v1900_v24  ;;  %v1927_v30 = vld [vmem:[#allocation2 + $0x28] sm:$0xff]  ;;  %v1926_v32 = vld [vmem:[#allocation2 + $0x20] sm:$0xff] }
 0x5f0   : > { %v1917_v28 = vmul.f32 %v1910_v22, %v1903_v26  ;;  %v1918_v29 = vmul.f32 %v1914_v23, %v1904_v27  ;;  %v2959_v22 = vld [vmem:[%s3928_s29 + $0x2] ss:$8 sm:$0x3] }
 0x5f2   : > { %1919 = vst [vmem:[#allocation2 + $0x40] sm:$0xf] %v1917_v28  ;;  %1920 = vst [vmem:[#allocation2 + $0x48] sm:$0xf] %v1918_v29 }
 0x5f5   : > { %v1929_v31 = vld [vmem:[#allocation2 + $0x38] sm:$0xff]  ;;  %v1928_v33 = vld [vmem:[#allocation2 + $0x30] sm:$0xff] }
 0x5f6   : > { %v3015_v35 = vpack.c.bf16 %v1929_v31, %v1927_v30  ;;  %v3017_v39 = vpack.c.bf16 %v1928_v33, %v1926_v32  ;;  %v2252_v30 = vrot.slane %v2959_v22, %v3257_v8  ;;  %v2256_v31 = vrot.slane %v2959_v22, %v3259_v9  ;;  %v2961_v33 = vld [vmem:[%s3928_s29 + $0x4] ss:$8 sm:$0x3] }
 0x5f8   : > { %3016 = vmatprep.subr.bf16.mxu1 %v3015_v35 }
 0x5f9   : > { %3018 = vmatpush1.bf16.msra.mxu1 %v3017_v39  ;;  %v1931_v40 = vld [vmem:[#allocation2 + $0x48] sm:$0xf]  ;;  %v1930_v44 = vld [vmem:[#allocation2 + $0x40] sm:$0xf] }
 0x5fa   : > { %2948 = vmatprep.subr.msk.mxu1 %vm848_vm8, %v1931_v40 }
 0x5fd   : > { %2949 = vmatpush1.msk.msra.mxu1 %vm848_vm8, %v1930_v44 }
 0x5fe   : > { %2950 = vmatmul.mubr.msk.f32.vlgmr.msra.gmra.mrb[4].mxu1 %vm844_vm9, %v1921_v43  ;;  %2969 = vmatprep.subr.msk.mxu1 %vm848_vm8, %v1546_v37  ;;  %v1936_v36 = vpop.permute.xlu1 %1935 }
 0x5ff   : > { %2970 = vmatpush1.msk.msra.mxu1 %vm848_vm8, %v1545_v38  ;;  %2562 = vmatprep.mubr.f32.mxu1 %v3084_v2 }
 0x600   : > { %2972 = vmatprep.subr.msk.mxu1 %vm848_vm8, %v3478_v42  ;;  %v2187_v42 = vpop.permute.xlu0 %2186 }
 0x602   : > { %2971 = vmatmul.mubr.msk.f32.vlgmr.msra.gmra.mrb[6].mxu1 %vm1550_vm6, %v2968_v45  ;;  %v2304_v45 = vrot.slane %v2961_v33, %v3257_v8 }
 0x603   : > { %2973 = vmatpush1.msk.msra.mxu1 %vm848_vm8, %v3476_v41  ;;  %2636 = vmatprep.mubr.f32.mxu1 %v3084_v2  ;;  %v2020_v41 = vld [vmem:[%s3885_s12] sm:$0xf] }
 0x6d1   : > { %v2013_v34 = vpop.f32.mrb[4].mxu1 }
 0x6d2   : > { %v2014_v37 = vadd.f32 %v2013_v34, %v1936_v36  ;;  %v2015_v38 = vpop.f32.mrb[5].mxu1 }
 0x6d3   : > { %v2016_v46 = vadd.f32 %v2015_v38, %v1936_v36  ;;  %v2308_v36 = vrot.slane %v2961_v33, %v3259_v9 }
 0x6d4   : > { %v2018_v48 = vmax.f32 %v2014_v37, 0.0  ;;  %v2963_v37 = vld [vmem:[%s3928_s29 + $0x6] ss:$8 sm:$0x3] }
 0x6d5   : > { %v2019_v47 = vmax.f32 %v2016_v46, 0.0 }
 0x6d7   : > { %2952 = vmatprep.subr.msk.mxu0 %vm848_vm8, %v2019_v47 }
 0x6d8   : > { %2953 = vmatpush1.msk.msra.mxu0 %vm848_vm8, %v2018_v48 }
 0x6d9   : > { %2954 = vmatmul.mubr.msk.f32.vlgmr.msra.gmra.mrb[4].mxu0 %vm1550_vm6, %v2951_v49  ;;  %2955 = vmatprep.subr.msk.mxu0 %vm848_vm8, %v3350_v53  ;;  %v2727_v53 = vld [vmem:[%s3890_s17] sm:$0xf] }
 0x6da   : > { %2956 = vmatpush1.msk.msra.mxu0 %vm848_vm8, %v3348_v52  ;;  %2176 = vmatprep.mubr.f32.mxu0 %v3084_v2  ;;  %v2404_v52 = vld [vmem:[%s3888_s15] sm:$0xf] }
 0x6e1   : > { %2957 = vmatmul.mubr.msk.f32.vlgmr.msra.gmra.mrb[4].mxu0 %vm1550_vm6, %v2020_v41  ;;  %v2354_v41 = vrot.slane %v2963_v37, %v3257_v8 }
 0x6e2   : > { %2483 = vmatprep.mubr.f32.mxu0 %v3084_v2 }
 0x7b4   : > { %v2178_v50 = vpop.f32.mrb[4].mxu0 }
 0x7b5   : > { %v2189_v51 = vadd.f32 %v2187_v42, %v2178_v50  ;;  %v2180_v54 = vpop.f32.mrb[5].mxu0 }
 0x7b6   : > { %v2190_v55 = vadd.f32 %v2187_v42, %v2180_v54  ;;  %v2358_v42 = vrot.slane %v2963_v37, %v3259_v9 }
 0x7b7   : > { %2291 = vst [vmem:[#allocation2 + $0x20] sm:$0xf] %v2189_v51  ;;  %2213 = vrot.lane.b32.xlu1 %v2189_v51, %s3087_s28 }
 0x7b8   : > { %2292 = vst [vmem:[#allocation2 + $0x28] sm:$0xf] %v2190_v55  ;;  %2215 = vrot.lane.b32.xlu0 %v2190_v55, %s3087_s28  ;;  %s3944_s28 = smov 113  }
 0x7bb   : > { %2263 = vrot.lane.b32.xlu1 %v2189_v51, %s3086_s2 }
 0x7bc   : > { %2265 = vrot.lane.b32.xlu0 %v2190_v55, %s3086_s2  ;;  %s3945_s2 = smov 111  }
 0x7bf   : > { %2191 = vrot.lane.b32.xlu1 %v2189_v51, %s3088_s21 }
 0x7c0   : > { %2193 = vrot.lane.b32.xlu0 %v2190_v55, %s3088_s21 }
 0x7c3   : > { %2241 = vrot.lane.b32.xlu1 %v2189_v51, %s3089_s1 }
 0x7c4   : > { %2243 = vrot.lane.b32.xlu0 %v2190_v55, %s3089_s1 }
 0x7c7   : > { %2293 = vrot.lane.b32.xlu1 %v2189_v51, %s3942_s23 }
 0x7c8   : > { %2295 = vrot.lane.b32.xlu0 %v2190_v55, %s3942_s23 }
 0x7cb   : > { %2343 = vrot.lane.b32.xlu1 %v2189_v51, %s3943_s24 }
 0x7cc   : > { %2345 = vrot.lane.b32.xlu0 %v2190_v55, %s3943_s24 }
 0x7cf   : > { %2321 = vrot.lane.b32.xlu1 %v2189_v51, %s3944_s28 }
 0x7d0   : > { %2323 = vrot.lane.b32.xlu0 %v2190_v55, %s3944_s28 }
 0x7d3   : > { %2371 = vrot.lane.b32.xlu1 %v2189_v51, %s3945_s2  ;;  %v2962_v51 = vld [vmem:[%s3928_s29 + $0x5] ss:$8 sm:$0x3] }
 0x7d4   : > { %2373 = vrot.lane.b32.xlu0 %v2190_v55, %s3945_s2  ;;  %v2336_v60 = vrot.slane %v2962_v51, %v3259_v9 }
 0x7d7   : > { %2407 = vperm.xlu1 %3062, %v2404_v52  }
 0x7d8   : > { %2730 = vperm.xlu0 %3061, %v2727_v53  }
 0x829   : > { %v2214_v59 = vpop.permute.xlu1 %2213 }
 0x82a   : > { %v2216_v61 = vpop.permute.xlu0 %2215 }
 0x82b   : > { %v2217_v62 = vsel %vm955_vm10, %v2214_v59, %v2216_v61  ;;  %v2218_v63 = vsel %vm955_vm10, %v2216_v61, %v2214_v59  ;;  %v2332_v59 = vrot.slane %v2962_v51, %v3257_v8 }
 0x82c   : > { %v2231_v3 = vmul.f32 %v2224_v57, %v2218_v63  ;;  %v2232_v4 = vmul.f32 %v2228_v58, %v2217_v62  ;;  %v2964_v62 = vld [vmem:[%s3928_s29 + $0x7] ss:$8 sm:$0x3] }
 0x82d   : > { %v2264_v10 = vpop.permute.xlu1 %2263 }
 0x82e   : > { %v2235_v12 = vrot.slane %v2231_v3, 4  ;;  %v2236_v13 = vrot.slane %v2232_v4, 4  ;;  %v2266_v14 = vpop.permute.xlu0 %2265 }
 0x82f   : > { %v2267_v15 = vsel %vm1009_vm11, %v2264_v10, %v2266_v14  ;;  %v2268_v16 = vsel %vm1009_vm11, %v2266_v14, %v2264_v10 }
 0x830   : > { %2239 = vst [vmem:[#allocation2] sm:$0xf0] %v2235_v12  ;;  %2240 = vst [vmem:[#allocation2 + $0x8] sm:$0xf0] %v2236_v13  ;;  %v2281_v17 = vmul.f32 %v2274_v5, %v2268_v16  ;;  %v2282_v18 = vmul.f32 %v2278_v6, %v2267_v15 }
 0x831   : > { %v2192_v21 = vpop.permute.xlu1 %2191 }
 0x832   : > { %v2285_v23 = vrot.slane %v2281_v17, 4  ;;  %v2286_v24 = vrot.slane %v2282_v18, 4  ;;  %v2194_v25 = vpop.permute.xlu0 %2193  ;;  %v2382_v18 = vrot.slane %v2964_v62, %v3257_v8 }
 0x833   : > { %v2195_v26 = vsel %vm932_vm12, %v2192_v21, %v2194_v25  ;;  %v2196_v27 = vsel %vm932_vm12, %v2194_v25, %v2192_v21 }
 0x834   : > { %2289 = vst [vmem:[#allocation2 + $0x10] sm:$0xf0] %v2285_v23  ;;  %2290 = vst [vmem:[#allocation2 + $0x18] sm:$0xf0] %v2286_v24  ;;  %v2209_v28 = vmul.f32 %v2202_v19, %v2196_v27  ;;  %v2210_v29 = vmul.f32 %v2206_v20, %v2195_v26  ;;  %v2386_v19 = vrot.slane %v2964_v62, %v3259_v9 }
 0x835   : > { %v2242_v32 = vpop.permute.xlu1 %2241 }
 0x836   : > { %2211 = vst [vmem:[#allocation2] sm:$0xf] %v2209_v28  ;;  %2212 = vst [vmem:[#allocation2 + $0x8] sm:$0xf] %v2210_v29  ;;  %v2244_v35 = vpop.permute.xlu0 %2243 }
 0x837   : > { %v2245_v39 = vsel %vm985_vm13, %v2242_v32, %v2244_v35  ;;  %v2246_v40 = vsel %vm985_vm13, %v2244_v35, %v2242_v32  ;;  %v2492_v32 = vld [vmem:[%s3889_s16] sm:$0xf] }
 0x838   : > { %v2259_v43 = vmul.f32 %v2252_v30, %v2246_v40  ;;  %v2260_v44 = vmul.f32 %v2256_v31, %v2245_v39  ;;  %2974 = vmatmul.mubr.msk.f32.vlgmr.msra.gmra.mrb[6].mxu1 %vm1550_vm6, %v2492_v32 }
 0x839   : > { %v2294_v34 = vpop.permute.xlu1 %2293  ;;  %2718 = vmatprep.mubr.f32.mxu1 %v3084_v2 }
 0x83a   : > { %2261 = vst [vmem:[#allocation2 + $0x10] sm:$0xf] %v2259_v43  ;;  %2262 = vst [vmem:[#allocation2 + $0x18] sm:$0xf] %v2260_v44  ;;  %v2296_v38 = vpop.permute.xlu0 %2295 }
 0x83b   : > { %v2297_v46 = vsel %vm1041_vm14, %v2294_v34, %v2296_v38  ;;  %v2298_v47 = vsel %vm1041_vm14, %v2296_v38, %v2294_v34 }
 0x83c   : > { %v2311_v48 = vmul.f32 %v2304_v45, %v2297_v46  ;;  %v2312_v49 = vmul.f32 %v2308_v36, %v2298_v47  ;;  %v2975_v36 = vld [vmem:[%s3889_s16 + $0x8] sm:$0xf]  ;;  %v2735_v47 = vld [vmem:[%s3891_s18] sm:$0xf] }
 0x83d   : > { %v2344_v50 = vpop.permute.xlu1 %2343  ;;  %v2395_v61 = vld [vmem:[#allocation2 + $0x8] sm:$0xff]  ;;  %v2394_v4 = vld [vmem:[#allocation2] sm:$0xff] }
 0x83e   : > { %v2315_v54 = vrot.slane %v2311_v48, 4  ;;  %v2316_v55 = vrot.slane %v2312_v49, 4  ;;  %v2346_v52 = vpop.permute.xlu0 %2345 }
 0x83f   : > { %v2347_v53 = vsel %vm1095_vm15, %v2344_v50, %v2346_v52  ;;  %v2348_v56 = vsel %vm1095_vm15, %v2346_v52, %v2344_v50 }
 0x840   : > { %2319 = vst [vmem:[#allocation2 + $0x20] sm:$0xf0] %v2315_v54  ;;  %2320 = vst [vmem:[#allocation2 + $0x28] sm:$0xf0] %v2316_v55  ;;  %v2361_v57 = vmul.f32 %v2354_v41, %v2347_v53  ;;  %v2362_v58 = vmul.f32 %v2358_v42, %v2348_v56 }
 0x841   : > { %v2322_v63 = vpop.permute.xlu1 %2321  ;;  %v2397_v3 = vld [vmem:[#allocation2 + $0x18] sm:$0xff]  ;;  %v2396_v5 = vld [vmem:[#allocation2 + $0x10] sm:$0xff] }
 0x842   : > { %v2365_v6 = vrot.slane %v2361_v57, 4  ;;  %v2366_v10 = vrot.slane %v2362_v58, 4  ;;  %v2324_v11 = vpop.permute.xlu0 %2323  ;;  %v3019_v12 = vpack.c.bf16 %v2397_v3, %v2395_v61  ;;  %v3021_v13 = vpack.c.bf16 %v2396_v5, %v2394_v4 }
 0x843   : > { %v2325_v14 = vsel %vm1071_vm7, %v2322_v63, %v2324_v11  ;;  %v2326_v15 = vsel %vm1071_vm7, %v2324_v11, %v2322_v63 }
 0x844   : > { %2369 = vst [vmem:[#allocation2 + $0x30] sm:$0xf0] %v2365_v6  ;;  %2370 = vst [vmem:[#allocation2 + $0x38] sm:$0xf0] %v2366_v10  ;;  %v2339_v16 = vmul.f32 %v2332_v59, %v2325_v14  ;;  %v2340_v17 = vmul.f32 %v2336_v60, %v2326_v15  ;;  %3020 = vmatprep.subr.bf16.mxu0 %v3019_v12 }
 0x845   : > { %v2372_v20 = vpop.permute.xlu1 %2371  ;;  %3022 = vmatpush1.bf16.msra.mxu0 %v3021_v13 }
 0x846   : > { %2341 = vst [vmem:[#allocation2 + $0x30] sm:$0xf] %v2339_v16  ;;  %2342 = vst [vmem:[#allocation2 + $0x38] sm:$0xf] %v2340_v17  ;;  %v2374_v21 = vpop.permute.xlu0 %2373 }
 0x847   : > { %v2375_v22 = vsel %vm3946_vm4, %v2372_v20, %v2374_v21  ;;  %v2376_v23 = vsel %vm3947_vm5, %v2374_v21, %v2372_v20  ;;  %v2399_v26 = vld [vmem:[#allocation2 + $0x28] sm:$0xff]  ;;  %v2398_v8 = vld [vmem:[#allocation2 + $0x20] sm:$0xff] }
 0x848   : > { %v2389_v24 = vmul.f32 %v2382_v18, %v2375_v22  ;;  %v2390_v25 = vmul.f32 %v2386_v19, %v2376_v23 }
 0x84a   : > { %2391 = vst [vmem:[#allocation2 + $0x40] sm:$0xf] %v2389_v24  ;;  %2392 = vst [vmem:[#allocation2 + $0x48] sm:$0xf] %v2390_v25 }
 0x84d   : > { %v2401_v27 = vld [vmem:[#allocation2 + $0x38] sm:$0xff]  ;;  %v2400_v28 = vld [vmem:[#allocation2 + $0x30] sm:$0xff] }
 0x84e   : > { %v3023_v9 = vpack.c.bf16 %v2401_v27, %v2399_v26  ;;  %v3025_v29 = vpack.c.bf16 %v2400_v28, %v2398_v8 }
 0x850   : > { %3024 = vmatprep.subr.bf16.mxu0 %v3023_v9 }
 0x851   : > { %3026 = vmatpush1.bf16.msra.mxu0 %v3025_v29  ;;  %v2403_v30 = vld [vmem:[#allocation2 + $0x48] sm:$0xf]  ;;  %v2402_v31 = vld [vmem:[#allocation2 + $0x40] sm:$0xf] }
 0x852   : > { %2965 = vmatprep.subr.msk.mxu0 %vm848_vm8, %v2403_v30 }
 0x855   : > { %2966 = vmatpush1.msk.msra.mxu0 %vm848_vm8, %v2402_v31 }
 0x856   : > { %2967 = vmatmul.mubr.msk.f32.vlgmr.msra.gmra.mrb[6].mxu0 %vm844_vm9, %v2393_v7  ;;  %v2408_v33 = vpop.permute.xlu1 %2407 }
 0x857   : > { %2809 = vmatprep.mubr.f32.mxu0 %v3084_v2  ;;  %v2731_v37 = vpop.permute.xlu0 %2730 }
 0x929   : > { %v2485_v35 = vpop.f32.mrb[6].mxu0 }
 0x92a   : > { %v2486_v39 = vadd.f32 %v2485_v35, %v2408_v33  ;;  %v2487_v40 = vpop.f32.mrb[7].mxu0 }
 0x92b   : > { %v2488_v43 = vadd.f32 %v2487_v40, %v2408_v33 }
 0x92c   : > { %v2490_v45 = vmax.f32 %v2486_v39, 0.0 }
 0x92d   : > { %v2491_v44 = vmax.f32 %v2488_v43, 0.0 }
 0x92f   : > { %2976 = vmatprep.subr.msk.mxu1 %vm848_vm8, %v2491_v44 }
 0x930   : > { %2977 = vmatpush1.msk.msra.mxu1 %vm848_vm8, %v2490_v45 }
 0x931   : > { %2978 = vmatmul.mubr.msk.f32.vlgmr.msra.gmra.mrb[6].mxu1 %vm1550_vm6, %v2975_v36 }
 0xa04   : > { %v2720_v34 = vpop.f32.mrb[6].mxu1 }
 0xa05   : > { %v2722_v2 = vpop.f32.mrb[7].mxu1  ;;  %v2733_v46 = vadd.f32 %v2731_v37, %v2720_v34 }
 0xa06   : > { %v2734_v38 = vadd.f32 %v2731_v37, %v2722_v2 }
 0xa08   : > { %2979 = vmatprep.subr.msk.mxu0 %vm848_vm8, %v2734_v38 }
 0xa09   : > { %2980 = vmatpush1.msk.msra.mxu0 %vm848_vm8, %v2733_v46 }
 0xa0a   : > { %2981 = vmatmul.mubr.msk.f32.vlgmr.msra.gmra.mrb[8].mxu0 %vm1550_vm6, %v2735_v47 }
 0xadd   : > { %v2811_v48 = vpop.f32.mrb[8].mxu0 }
 0xade   : > { %v2816_v49 = vsel %vm848_vm8, %v2811_v48, 0.0  ;;  %v2813_v41 = vpop.f32.mrb[9].mxu0 }
 0xadf   : > { %v2817_v42 = vsel %vm848_vm8, %v2813_v41, 0.0 }
 0xae0   : > { %v2818_v50 = vadd.f32 %v2817_v42, %v2816_v49 }
 0xae2   : > { %2819 = vadd.xlane.f32.xlu1 %v2818_v50 }
 0xb6f   : > { %v2820_v51 = vpop.xlane.xlu1 %2819 }
 0xb70   : > { %v2982_v54 = vmul.f32 -0.00390625, %v2820_v51 }
 0xb72   : > { %v2824_v55 = vmul.f32 1.442695, %v2982_v54 }
 0xb74   : > { %3064 = vpow2.f32 %v2824_v55 }
 0xb7e   : > { %v3065_v52 = vpop.eup %3064 }
 0xb7f   : > { %v2826_v53 = vadd.f32 1.0, %v3065_v52 }
 0xb81   : > { %3066 = vrcp.f32 %v2826_v53 }
 0xb8b   : > { %v3067_v56 = vpop.eup %3066 }
 0xb8c   : > { %v2829_v57 = vmul.f32 %v3067_v56, %v2733_v46  ;;  %v2830_v58 = vmul.f32 %v3067_v56, %v2734_v38 }
 0xb8e   : > { %v2831_v59 = vadd.f32 %v2829_v57, %v3210_v0  ;;  %v2832_v60 = vadd.f32 %v2830_v58, %v3219_v1 }
 0xb90   : > { %v2835_v61 = vcombine.low %v2831_v59, %v2832_v60 }
 0xb92   : > { %2837 = vst [vmem:[%s602_s3] sm:$0xff] %v2835_v61 }
 0xb93 PF: > { %s29_s0 = sadd.s32 1, %s3074_s0  }
 0xb94   : > { %p26_p4 = scmp.ge.s32.totalorder %s29_s0, 4  }
 0xb96   :  { %28 = sbr.rel (!%p26_p4) target bundleno = 5 (0x5), region = 145 }

</bundles_post_ra>
